<compile_context>
chip_gen: v7x
topology: tpu7x:2x2x1
jax: 0.10.0
libtpu: 0.0.40
codegen_flags: <defaults>
</compile_context>

<pallas_src>
import jax
import jax.numpy as jnp
import numpy as np
from jax.experimental import pallas as pl
from jax.experimental.pallas import tpu as pltpu

# Model hyper-parameters (c chosen small & divisible by 8, consistent with the module).
S_IN = 4            # input channels "s"
N_W = 4             # input width "n", consumed by the first conv kernel (1, n)
K = 32              # hidden channels "k"
L = 16              # pre-classifier channels "l"
C_LEN = 16          # sequence length "c" (power of two for the bit-reversed pool layout)
HF = C_LEN // 8     # height after three (2,1) avg-pools == final conv kernel height
NUM_RES = 6         # residue modules
NUM_CLASSES = 3
OUT_PAD = 128       # lane-padded kernel output width
BN_EPS = 1e-5


def _bitrev_permutation(n):
    """perm[p] = bit-reverse(p); rows placed in this order make every (2,1)
    avg-pool a contiguous first-half/second-half average."""
    bits = int(np.log2(n))
    assert (1 << bits) == n
    perm = np.zeros(n, dtype=np.int32)
    for p in range(n):
        r = 0
        for b in range(bits):
            r |= ((p >> b) & 1) << (bits - 1 - b)
        perm[p] = r
    return perm


_BITREV_PERM = _bitrev_permutation(C_LEN)


def _model_kernel(x_ref, w1_ref, b1_ref, wres_ref, bres_ref,
                  w2_ref, b2_ref, wcls_ref, bcls_ref, out_ref):
    # bf16 operands, f32 accumulation on the MXU.
    def mm(a, w):
        return jnp.dot(a.astype(jnp.bfloat16), w,
                       preferred_element_type=jnp.float32)

    # Conv2d(s, k, (1, n)) + folded BN + ReLU  ->  one (C*TB, 16) x (16, K) matmul.
    h = jnp.maximum(mm(x_ref[...], w1_ref[...]) + b1_ref[...], 0.0)     # (C*TB, K)

    def residue(h, i):
        a = jnp.maximum(mm(h, wres_ref[2 * i]) + bres_ref[2 * i], 0.0)
        b = jnp.maximum(mm(a, wres_ref[2 * i + 1]) + bres_ref[2 * i + 1], 0.0)
        return h + b

    def pool(h):
        # Rows are in (bit-reversed seq position, batch) order: the (2,1)
        # avg-pool is the average of the two contiguous, 8-aligned halves.
        # Pure VPU work; never mixes batch elements.
        m = h.shape[0] // 2
        return 0.5 * (h[:m] + h[m:])

    h = residue(h, 0)
    h = residue(h, 1)
    h = pool(h)                                                          # (C/2*TB, K)
    h = residue(h, 2)
    h = residue(h, 3)
    h = pool(h)                                                          # (C/4*TB, K)
    h = residue(h, 4)
    h = residue(h, 5)
    h = pool(h)                                                          # (HF*TB, K)

    # Conv2d(k, l, (c//8, 1)) + folded BN + ReLU: after the third pool the HF
    # kernel rows are contiguous TB-row blocks -> HF small weight matmuls.
    tb_rows = h.shape[0] // HF
    z = b2_ref[...]
    for hh in range(HF):
        z = z + mm(h[hh * tb_rows:(hh + 1) * tb_rows], w2_ref[hh])       # (TB, L)
    z = jnp.maximum(z, 0.0)
    # AdaptiveAvgPool2d(1) on a (1,1) spatial map is the identity.

    # Classifier, lane-padded to 128 for an unmasked full-lane store.
    out_ref[...] = mm(z, wcls_ref[...]) + bcls_ref[...]                  # (TB, 128)


def _choose_tb(batch):
    """Batch tile: multiple of 8, sized so the whole batch runs in ~2 grid
    steps (keeps both v7x TensorCores busy; free on v5e/v6e)."""
    half = (batch + 1) // 2
    tb = ((half + 7) // 8) * 8
    return int(min(64, max(8, tb)))


def model_forward(x_nchw, params, *, tb=None):
    w1, b1, wres, bres, w2, b2, wcls, bcls = params
    B = x_nchw.shape[0]
    if tb is None:
        tb = _choose_tb(B)
    assert tb % 8 == 0
    nb = pl.cdiv(B, tb)
    b_pad = nb * tb

    # NCHW (B, s, c, n) -> (B, c, s*n); flatten order (cin, w) matches conv-weight flatten.
    x = jnp.transpose(x_nchw, (0, 2, 1, 3)).reshape(B, C_LEN, S_IN * N_W)
    # Bit-reversed sequence order (pool pairs become half-slab averages).
    x = jnp.take(x, jnp.asarray(_BITREV_PERM), axis=1)
    if b_pad != B:
        x = jnp.concatenate(
            [x, jnp.zeros((b_pad - B, C_LEN, S_IN * N_W), x.dtype)], axis=0)
    # Per batch tile: rows ordered (seq position OUTER, batch element INNER).
    x2d = (x.reshape(nb, tb, C_LEN, S_IN * N_W)
            .transpose(0, 2, 1, 3)
            .reshape(nb * C_LEN * tb, S_IN * N_W))

    # Lane-padded classifier (unmasked stores; wrapper slices [:, :3]).
    wcls_pad = jnp.zeros((L, OUT_PAD), jnp.bfloat16).at[:, :NUM_CLASSES].set(wcls)
    bcls_pad = jnp.zeros((1, OUT_PAD), jnp.float32).at[:, :NUM_CLASSES].set(bcls)

    def full(a):
        # Constant block index -> fetched once, stays resident in VMEM.
        return pl.BlockSpec(a.shape, lambda b, nd=a.ndim: (0,) * nd)

    out = pl.pallas_call(
        _model_kernel,
        out_shape=jax.ShapeDtypeStruct((b_pad, OUT_PAD), jnp.float32),
        grid_spec=pltpu.PrefetchScalarGridSpec(
            num_scalar_prefetch=0,
            grid=(nb,),
            in_specs=[
                pl.BlockSpec((tb * C_LEN, S_IN * N_W), lambda b: (b, 0)),
                full(w1), full(b1), full(wres), full(bres),
                full(w2), full(b2), full(wcls_pad), full(bcls_pad),
            ],
            out_specs=pl.BlockSpec((tb, OUT_PAD), lambda b: (b, 0)),
        ),
        compiler_params=pltpu.CompilerParams(dimension_semantics=("parallel",)),
    )(x2d, w1, b1, wres, bres, w2, b2, wcls_pad, bcls_pad)
    return out[:B, :NUM_CLASSES]


def _make_params(key):
    keys = iter(jax.random.split(key, 200))

    def nrm(shape, scale=0.1):
        return scale * jax.random.normal(next(keys), shape, dtype=jnp.float32)

    def bn_fold(cch):
        gamma = 1.0 + 0.1 * jax.random.normal(next(keys), (cch,), dtype=jnp.float32)
        beta = 0.1 * jax.random.normal(next(keys), (cch,), dtype=jnp.float32)
        mean = 0.1 * jax.random.normal(next(keys), (cch,), dtype=jnp.float32)
        var = jnp.abs(jax.random.normal(next(keys), (cch,), dtype=jnp.float32)) + 0.5
        scale = gamma / jnp.sqrt(var + BN_EPS)
        shift = beta - mean * scale
        return scale, shift

    # First conv (K, S_IN, 1, N_W) + BN(K), folded; weight stored bf16.
    w1_pt = nrm((K, S_IN, 1, N_W))
    b1_pt = nrm((K,))
    s1, t1 = bn_fold(K)
    w1 = (w1_pt.reshape(K, S_IN * N_W).T * s1[None, :]).astype(jnp.bfloat16)  # (16, K)
    b1 = (b1_pt * s1 + t1).reshape(1, K)

    # Six residue modules, each with two (Conv1x1 + BN) folded; weights bf16.
    wres_list, bres_list = [], []
    for _ in range(2 * NUM_RES):
        w_pt = nrm((K, K, 1, 1))
        b_pt = nrm((K,))
        sc, sh = bn_fold(K)
        wres_list.append((w_pt.reshape(K, K).T * sc[None, :]).astype(jnp.bfloat16))
        bres_list.append((b_pt * sc + sh).reshape(1, K))
    wres = jnp.stack(wres_list)                               # (12, K, K) bf16
    bres = jnp.stack(bres_list)                               # (12, 1, K) f32

    # Final conv (L, K, HF, 1) + BN(L), folded; per-kernel-row weights, bf16.
    w2_pt = nrm((L, K, HF, 1))
    b2_pt = nrm((L,))
    s2, t2 = bn_fold(L)
    w2 = jnp.stack([(w2_pt[:, :, hh, 0].T * s2[None, :]).astype(jnp.bfloat16)
                    for hh in range(HF)])                     # (HF, K, L) bf16
    b2 = (b2_pt * s2 + t2).reshape(1, L)

    # Classifier Linear(L, 3); weight bf16.
    wcls_pt = nrm((NUM_CLASSES, L))
    bcls_pt = nrm((NUM_CLASSES,))
    wcls = wcls_pt.T.astype(jnp.bfloat16)                     # (L, 3) bf16
    bcls = bcls_pt.reshape(1, NUM_CLASSES)

    return (w1, b1, wres, bres, w2, b2, wcls, bcls)


def _reference_forward(x_nchw, params):
    """Pure-JAX reference with the same bf16-operand / f32-accumulation rounding points."""
    w1, b1, wres, bres, w2, b2, wcls, bcls = params
    B = x_nchw.shape[0]
    x = jnp.transpose(x_nchw, (0, 2, 1, 3)).reshape(B, C_LEN, S_IN * N_W)

    def mm(a, w):
        return jnp.einsum('...ik,kj->...ij', a.astype(jnp.bfloat16), w,
                          preferred_element_type=jnp.float32)

    def pool(h):
        return 0.5 * (h[:, 0::2, :] + h[:, 1::2, :])

    h = jnp.maximum(mm(x, w1) + b1, 0.0)                      # (B, c, K)

    def res(h, i):
        a = jnp.maximum(mm(h, wres[2 * i]) + bres[2 * i], 0.0)
        b = jnp.maximum(mm(a, wres[2 * i + 1]) + bres[2 * i + 1], 0.0)
        return h + b

    h = res(h, 0); h = res(h, 1); h = pool(h)
    h = res(h, 2); h = res(h, 3); h = pool(h)
    h = res(h, 4); h = res(h, 5); h = pool(h)                 # (B, HF, K)

    z = b2 + sum(mm(h[:, hh, :], w2[hh]) for hh in range(HF))
    z = jnp.maximum(z, 0.0)
    return mm(z, wcls) + bcls


if __name__ == "__main__":
    key = jax.random.PRNGKey(0)
    k_x, k_p = jax.random.split(key)

    B = 32                                       # auto-tiled: 2 grid steps of TB=16
    x = jax.random.normal(k_x, (B, S_IN, C_LEN, N_W), dtype=jnp.float32)  # NCHW
    params = _make_params(k_p)

    out = jax.block_until_ready(model_forward(x, params))

    ref = jax.block_until_ready(_reference_forward(x, params))
    np.testing.assert_allclose(np.asarray(out), np.asarray(ref), rtol=2e-3, atol=2e-3)
    assert out.shape == (B, NUM_CLASSES)

    print("KERNEL_OK")
</pallas_src>

<mosaic_0001>
module attributes {stable_mosaic.version = 11 : i64} {
  func.func @_model_kernel(%arg0: i32, %arg1: memref<256x16xf32, #tpu.memory_space<vmem>>, %arg2: memref<16x32xbf16, #tpu.memory_space<vmem>>, %arg3: memref<1x32xf32, #tpu.memory_space<vmem>>, %arg4: memref<12x32x32xbf16, #tpu.memory_space<vmem>>, %arg5: memref<12x1x32xf32, #tpu.memory_space<vmem>>, %arg6: memref<2x32x16xbf16, #tpu.memory_space<vmem>>, %arg7: memref<1x16xf32, #tpu.memory_space<vmem>>, %arg8: memref<16x128xbf16, #tpu.memory_space<vmem>>, %arg9: memref<1x128xf32, #tpu.memory_space<vmem>>, %arg10: memref<16x128xf32, #tpu.memory_space<vmem>>) attributes {dimension_semantics = [#tpu.dimension_semantics<parallel>], iteration_bounds = array<i64: 2>, scalar_prefetch = 0 : i64, scratch_operands = 0 : i64, tpu.core_type = #tpu.core_type<tc>, window_params = [{transform_indices = @transform_0, window_bounds = array<i64: 256, 16>}, {pipeline_mode = #tpu.pipeline_mode<synchronous>, transform_indices = @transform_1, window_bounds = array<i64: 16, 32>}, {pipeline_mode = #tpu.pipeline_mode<synchronous>, transform_indices = @transform_2, window_bounds = array<i64: 1, 32>}, {pipeline_mode = #tpu.pipeline_mode<synchronous>, transform_indices = @transform_3, window_bounds = array<i64: 12, 32, 32>}, {pipeline_mode = #tpu.pipeline_mode<synchronous>, transform_indices = @transform_4, window_bounds = array<i64: 12, 1, 32>}, {pipeline_mode = #tpu.pipeline_mode<synchronous>, transform_indices = @transform_5, window_bounds = array<i64: 2, 32, 16>}, {pipeline_mode = #tpu.pipeline_mode<synchronous>, transform_indices = @transform_6, window_bounds = array<i64: 1, 16>}, {pipeline_mode = #tpu.pipeline_mode<synchronous>, transform_indices = @transform_7, window_bounds = array<i64: 16, 128>}, {pipeline_mode = #tpu.pipeline_mode<synchronous>, transform_indices = @transform_8, window_bounds = array<i64: 1, 128>}, {transform_indices = @transform_9, window_bounds = array<i64: 16, 128>}]} {
    %c0 = arith.constant 0 : index
    %c0_0 = arith.constant 0 : index
    %0 = vector.load %arg1[%c0, %c0_0] : memref<256x16xf32, #tpu.memory_space<vmem>>, vector<256x16xf32>
    %c0_1 = arith.constant 0 : index
    %c0_2 = arith.constant 0 : index
    %1 = vector.load %arg2[%c0_1, %c0_2] : memref<16x32xbf16, #tpu.memory_space<vmem>>, vector<16x32xbf16>
    %2 = arith.truncf %0 : vector<256x16xf32> to vector<256x16xbf16>
    %cst = arith.constant dense<0.000000e+00> : vector<256x32xf32>
    %3 = tpu.matmul %2, %1, %cst {dimension_numbers = #tpu.dot_dimension_numbers<[1], [0], [0], [1], [0, 0, 1, 1], [], []>} : vector<256x16xbf16>, vector<16x32xbf16>, vector<256x32xf32> -> vector<256x32xf32>
    %c0_3 = arith.constant 0 : index
    %c0_4 = arith.constant 0 : index
    %4 = vector.load %arg3[%c0_3, %c0_4] : memref<1x32xf32, #tpu.memory_space<vmem>>, vector<1x32xf32>
    %5 = vector.broadcast %4 : vector<1x32xf32> to vector<256x32xf32>
    %6 = arith.addf %3, %5 : vector<256x32xf32>
    %cst_5 = arith.constant 0.000000e+00 : f32
    %7 = vector.broadcast %cst_5 : f32 to vector<256x32xf32>
    %8 = arith.maximumf %6, %7 : vector<256x32xf32>
    %c0_6 = arith.constant 0 : index
    %c0_7 = arith.constant 0 : index
    %c0_8 = arith.constant 0 : index
    %9 = vector.load %arg4[%c0_6, %c0_7, %c0_8] : memref<12x32x32xbf16, #tpu.memory_space<vmem>>, vector<1x32x32xbf16>
    %10 = vector.shape_cast %9 : vector<1x32x32xbf16> to vector<32x32xbf16>
    %11 = arith.truncf %8 : vector<256x32xf32> to vector<256x32xbf16>
    %cst_9 = arith.constant dense<0.000000e+00> : vector<256x32xf32>
    %12 = tpu.matmul %11, %10, %cst_9 {dimension_numbers = #tpu.dot_dimension_numbers<[1], [0], [0], [1], [0, 0, 1, 1], [], []>} : vector<256x32xbf16>, vector<32x32xbf16>, vector<256x32xf32> -> vector<256x32xf32>
    %c0_10 = arith.constant 0 : index
    %c0_11 = arith.constant 0 : index
    %c0_12 = arith.constant 0 : index
    %13 = vector.load %arg5[%c0_10, %c0_11, %c0_12] : memref<12x1x32xf32, #tpu.memory_space<vmem>>, vector<1x1x32xf32>
    %14 = vector.shape_cast %13 : vector<1x1x32xf32> to vector<1x32xf32>
    %15 = vector.broadcast %14 : vector<1x32xf32> to vector<256x32xf32>
    %16 = arith.addf %12, %15 : vector<256x32xf32>
    %cst_13 = arith.constant 0.000000e+00 : f32
    %17 = vector.broadcast %cst_13 : f32 to vector<256x32xf32>
    %18 = arith.maximumf %16, %17 : vector<256x32xf32>
    %c1 = arith.constant 1 : index
    %c0_14 = arith.constant 0 : index
    %c0_15 = arith.constant 0 : index
    %19 = vector.load %arg4[%c1, %c0_14, %c0_15] : memref<12x32x32xbf16, #tpu.memory_space<vmem>>, vector<1x32x32xbf16>
    %20 = vector.shape_cast %19 : vector<1x32x32xbf16> to vector<32x32xbf16>
    %21 = arith.truncf %18 : vector<256x32xf32> to vector<256x32xbf16>
    %cst_16 = arith.constant dense<0.000000e+00> : vector<256x32xf32>
    %22 = tpu.matmul %21, %20, %cst_16 {dimension_numbers = #tpu.dot_dimension_numbers<[1], [0], [0], [1], [0, 0, 1, 1], [], []>} : vector<256x32xbf16>, vector<32x32xbf16>, vector<256x32xf32> -> vector<256x32xf32>
    %c1_17 = arith.constant 1 : index
    %c0_18 = arith.constant 0 : index
    %c0_19 = arith.constant 0 : index
    %23 = vector.load %arg5[%c1_17, %c0_18, %c0_19] : memref<12x1x32xf32, #tpu.memory_space<vmem>>, vector<1x1x32xf32>
    %24 = vector.shape_cast %23 : vector<1x1x32xf32> to vector<1x32xf32>
    %25 = vector.broadcast %24 : vector<1x32xf32> to vector<256x32xf32>
    %26 = arith.addf %22, %25 : vector<256x32xf32>
    %cst_20 = arith.constant 0.000000e+00 : f32
    %27 = vector.broadcast %cst_20 : f32 to vector<256x32xf32>
    %28 = arith.maximumf %26, %27 : vector<256x32xf32>
    %29 = arith.addf %8, %28 : vector<256x32xf32>
    %c2 = arith.constant 2 : index
    %c0_21 = arith.constant 0 : index
    %c0_22 = arith.constant 0 : index
    %30 = vector.load %arg4[%c2, %c0_21, %c0_22] : memref<12x32x32xbf16, #tpu.memory_space<vmem>>, vector<1x32x32xbf16>
    %31 = vector.shape_cast %30 : vector<1x32x32xbf16> to vector<32x32xbf16>
    %32 = arith.truncf %29 : vector<256x32xf32> to vector<256x32xbf16>
    %cst_23 = arith.constant dense<0.000000e+00> : vector<256x32xf32>
    %33 = tpu.matmul %32, %31, %cst_23 {dimension_numbers = #tpu.dot_dimension_numbers<[1], [0], [0], [1], [0, 0, 1, 1], [], []>} : vector<256x32xbf16>, vector<32x32xbf16>, vector<256x32xf32> -> vector<256x32xf32>
    %c2_24 = arith.constant 2 : index
    %c0_25 = arith.constant 0 : index
    %c0_26 = arith.constant 0 : index
    %34 = vector.load %arg5[%c2_24, %c0_25, %c0_26] : memref<12x1x32xf32, #tpu.memory_space<vmem>>, vector<1x1x32xf32>
    %35 = vector.shape_cast %34 : vector<1x1x32xf32> to vector<1x32xf32>
    %36 = vector.broadcast %35 : vector<1x32xf32> to vector<256x32xf32>
    %37 = arith.addf %33, %36 : vector<256x32xf32>
    %cst_27 = arith.constant 0.000000e+00 : f32
    %38 = vector.broadcast %cst_27 : f32 to vector<256x32xf32>
    %39 = arith.maximumf %37, %38 : vector<256x32xf32>
    %c3 = arith.constant 3 : index
    %c0_28 = arith.constant 0 : index
    %c0_29 = arith.constant 0 : index
    %40 = vector.load %arg4[%c3, %c0_28, %c0_29] : memref<12x32x32xbf16, #tpu.memory_space<vmem>>, vector<1x32x32xbf16>
    %41 = vector.shape_cast %40 : vector<1x32x32xbf16> to vector<32x32xbf16>
    %42 = arith.truncf %39 : vector<256x32xf32> to vector<256x32xbf16>
    %cst_30 = arith.constant dense<0.000000e+00> : vector<256x32xf32>
    %43 = tpu.matmul %42, %41, %cst_30 {dimension_numbers = #tpu.dot_dimension_numbers<[1], [0], [0], [1], [0, 0, 1, 1], [], []>} : vector<256x32xbf16>, vector<32x32xbf16>, vector<256x32xf32> -> vector<256x32xf32>
    %c3_31 = arith.constant 3 : index
    %c0_32 = arith.constant 0 : index
    %c0_33 = arith.constant 0 : index
    %44 = vector.load %arg5[%c3_31, %c0_32, %c0_33] : memref<12x1x32xf32, #tpu.memory_space<vmem>>, vector<1x1x32xf32>
    %45 = vector.shape_cast %44 : vector<1x1x32xf32> to vector<1x32xf32>
    %46 = vector.broadcast %45 : vector<1x32xf32> to vector<256x32xf32>
    %47 = arith.addf %43, %46 : vector<256x32xf32>
    %cst_34 = arith.constant 0.000000e+00 : f32
    %48 = vector.broadcast %cst_34 : f32 to vector<256x32xf32>
    %49 = arith.maximumf %47, %48 : vector<256x32xf32>
    %50 = arith.addf %29, %49 : vector<256x32xf32>
    %51 = vector.extract_strided_slice %50 {offsets = [0, 0], sizes = [128, 32], strides = [1, 1]} : vector<256x32xf32> to vector<128x32xf32>
    %52 = vector.extract_strided_slice %50 {offsets = [128, 0], sizes = [128, 32], strides = [1, 1]} : vector<256x32xf32> to vector<128x32xf32>
    %53 = arith.addf %51, %52 : vector<128x32xf32>
    %cst_35 = arith.constant 5.000000e-01 : f32
    %54 = vector.broadcast %cst_35 : f32 to vector<128x32xf32>
    %55 = arith.mulf %54, %53 : vector<128x32xf32>
    %c4 = arith.constant 4 : index
    %c0_36 = arith.constant 0 : index
    %c0_37 = arith.constant 0 : index
    %56 = vector.load %arg4[%c4, %c0_36, %c0_37] : memref<12x32x32xbf16, #tpu.memory_space<vmem>>, vector<1x32x32xbf16>
    %57 = vector.shape_cast %56 : vector<1x32x32xbf16> to vector<32x32xbf16>
    %58 = arith.truncf %55 : vector<128x32xf32> to vector<128x32xbf16>
    %cst_38 = arith.constant dense<0.000000e+00> : vector<128x32xf32>
    %59 = tpu.matmul %58, %57, %cst_38 {dimension_numbers = #tpu.dot_dimension_numbers<[1], [0], [0], [1], [0, 0, 1, 1], [], []>} : vector<128x32xbf16>, vector<32x32xbf16>, vector<128x32xf32> -> vector<128x32xf32>
    %c4_39 = arith.constant 4 : index
    %c0_40 = arith.constant 0 : index
    %c0_41 = arith.constant 0 : index
    %60 = vector.load %arg5[%c4_39, %c0_40, %c0_41] : memref<12x1x32xf32, #tpu.memory_space<vmem>>, vector<1x1x32xf32>
    %61 = vector.shape_cast %60 : vector<1x1x32xf32> to vector<1x32xf32>
    %62 = vector.broadcast %61 : vector<1x32xf32> to vector<128x32xf32>
    %63 = arith.addf %59, %62 : vector<128x32xf32>
    %cst_42 = arith.constant 0.000000e+00 : f32
    %64 = vector.broadcast %cst_42 : f32 to vector<128x32xf32>
    %65 = arith.maximumf %63, %64 : vector<128x32xf32>
    %c5 = arith.constant 5 : index
    %c0_43 = arith.constant 0 : index
    %c0_44 = arith.constant 0 : index
    %66 = vector.load %arg4[%c5, %c0_43, %c0_44] : memref<12x32x32xbf16, #tpu.memory_space<vmem>>, vector<1x32x32xbf16>
    %67 = vector.shape_cast %66 : vector<1x32x32xbf16> to vector<32x32xbf16>
    %68 = arith.truncf %65 : vector<128x32xf32> to vector<128x32xbf16>
    %cst_45 = arith.constant dense<0.000000e+00> : vector<128x32xf32>
    %69 = tpu.matmul %68, %67, %cst_45 {dimension_numbers = #tpu.dot_dimension_numbers<[1], [0], [0], [1], [0, 0, 1, 1], [], []>} : vector<128x32xbf16>, vector<32x32xbf16>, vector<128x32xf32> -> vector<128x32xf32>
    %c5_46 = arith.constant 5 : index
    %c0_47 = arith.constant 0 : index
    %c0_48 = arith.constant 0 : index
    %70 = vector.load %arg5[%c5_46, %c0_47, %c0_48] : memref<12x1x32xf32, #tpu.memory_space<vmem>>, vector<1x1x32xf32>
    %71 = vector.shape_cast %70 : vector<1x1x32xf32> to vector<1x32xf32>
    %72 = vector.broadcast %71 : vector<1x32xf32> to vector<128x32xf32>
    %73 = arith.addf %69, %72 : vector<128x32xf32>
    %cst_49 = arith.constant 0.000000e+00 : f32
    %74 = vector.broadcast %cst_49 : f32 to vector<128x32xf32>
    %75 = arith.maximumf %73, %74 : vector<128x32xf32>
    %76 = arith.addf %55, %75 : vector<128x32xf32>
    %c6 = arith.constant 6 : index
    %c0_50 = arith.constant 0 : index
    %c0_51 = arith.constant 0 : index
    %77 = vector.load %arg4[%c6, %c0_50, %c0_51] : memref<12x32x32xbf16, #tpu.memory_space<vmem>>, vector<1x32x32xbf16>
    %78 = vector.shape_cast %77 : vector<1x32x32xbf16> to vector<32x32xbf16>
    %79 = arith.truncf %76 : vector<128x32xf32> to vector<128x32xbf16>
    %cst_52 = arith.constant dense<0.000000e+00> : vector<128x32xf32>
    %80 = tpu.matmul %79, %78, %cst_52 {dimension_numbers = #tpu.dot_dimension_numbers<[1], [0], [0], [1], [0, 0, 1, 1], [], []>} : vector<128x32xbf16>, vector<32x32xbf16>, vector<128x32xf32> -> vector<128x32xf32>
    %c6_53 = arith.constant 6 : index
    %c0_54 = arith.constant 0 : index
    %c0_55 = arith.constant 0 : index
    %81 = vector.load %arg5[%c6_53, %c0_54, %c0_55] : memref<12x1x32xf32, #tpu.memory_space<vmem>>, vector<1x1x32xf32>
    %82 = vector.shape_cast %81 : vector<1x1x32xf32> to vector<1x32xf32>
    %83 = vector.broadcast %82 : vector<1x32xf32> to vector<128x32xf32>
    %84 = arith.addf %80, %83 : vector<128x32xf32>
    %cst_56 = arith.constant 0.000000e+00 : f32
    %85 = vector.broadcast %cst_56 : f32 to vector<128x32xf32>
    %86 = arith.maximumf %84, %85 : vector<128x32xf32>
    %c7 = arith.constant 7 : index
    %c0_57 = arith.constant 0 : index
    %c0_58 = arith.constant 0 : index
    %87 = vector.load %arg4[%c7, %c0_57, %c0_58] : memref<12x32x32xbf16, #tpu.memory_space<vmem>>, vector<1x32x32xbf16>
    %88 = vector.shape_cast %87 : vector<1x32x32xbf16> to vector<32x32xbf16>
    %89 = arith.truncf %86 : vector<128x32xf32> to vector<128x32xbf16>
    %cst_59 = arith.constant dense<0.000000e+00> : vector<128x32xf32>
    %90 = tpu.matmul %89, %88, %cst_59 {dimension_numbers = #tpu.dot_dimension_numbers<[1], [0], [0], [1], [0, 0, 1, 1], [], []>} : vector<128x32xbf16>, vector<32x32xbf16>, vector<128x32xf32> -> vector<128x32xf32>
    %c7_60 = arith.constant 7 : index
    %c0_61 = arith.constant 0 : index
    %c0_62 = arith.constant 0 : index
    %91 = vector.load %arg5[%c7_60, %c0_61, %c0_62] : memref<12x1x32xf32, #tpu.memory_space<vmem>>, vector<1x1x32xf32>
    %92 = vector.shape_cast %91 : vector<1x1x32xf32> to vector<1x32xf32>
    %93 = vector.broadcast %92 : vector<1x32xf32> to vector<128x32xf32>
    %94 = arith.addf %90, %93 : vector<128x32xf32>
    %cst_63 = arith.constant 0.000000e+00 : f32
    %95 = vector.broadcast %cst_63 : f32 to vector<128x32xf32>
    %96 = arith.maximumf %94, %95 : vector<128x32xf32>
    %97 = arith.addf %76, %96 : vector<128x32xf32>
    %98 = vector.extract_strided_slice %97 {offsets = [0, 0], sizes = [64, 32], strides = [1, 1]} : vector<128x32xf32> to vector<64x32xf32>
    %99 = vector.extract_strided_slice %97 {offsets = [64, 0], sizes = [64, 32], strides = [1, 1]} : vector<128x32xf32> to vector<64x32xf32>
    %100 = arith.addf %98, %99 : vector<64x32xf32>
    %cst_64 = arith.constant 5.000000e-01 : f32
    %101 = vector.broadcast %cst_64 : f32 to vector<64x32xf32>
    %102 = arith.mulf %101, %100 : vector<64x32xf32>
    %c8 = arith.constant 8 : index
    %c0_65 = arith.constant 0 : index
    %c0_66 = arith.constant 0 : index
    %103 = vector.load %arg4[%c8, %c0_65, %c0_66] : memref<12x32x32xbf16, #tpu.memory_space<vmem>>, vector<1x32x32xbf16>
    %104 = vector.shape_cast %103 : vector<1x32x32xbf16> to vector<32x32xbf16>
    %105 = arith.truncf %102 : vector<64x32xf32> to vector<64x32xbf16>
    %cst_67 = arith.constant dense<0.000000e+00> : vector<64x32xf32>
    %106 = tpu.matmul %105, %104, %cst_67 {dimension_numbers = #tpu.dot_dimension_numbers<[1], [0], [0], [1], [0, 0, 1, 1], [], []>} : vector<64x32xbf16>, vector<32x32xbf16>, vector<64x32xf32> -> vector<64x32xf32>
    %c8_68 = arith.constant 8 : index
    %c0_69 = arith.constant 0 : index
    %c0_70 = arith.constant 0 : index
    %107 = vector.load %arg5[%c8_68, %c0_69, %c0_70] : memref<12x1x32xf32, #tpu.memory_space<vmem>>, vector<1x1x32xf32>
    %108 = vector.shape_cast %107 : vector<1x1x32xf32> to vector<1x32xf32>
    %109 = vector.broadcast %108 : vector<1x32xf32> to vector<64x32xf32>
    %110 = arith.addf %106, %109 : vector<64x32xf32>
    %cst_71 = arith.constant 0.000000e+00 : f32
    %111 = vector.broadcast %cst_71 : f32 to vector<64x32xf32>
    %112 = arith.maximumf %110, %111 : vector<64x32xf32>
    %c9 = arith.constant 9 : index
    %c0_72 = arith.constant 0 : index
    %c0_73 = arith.constant 0 : index
    %113 = vector.load %arg4[%c9, %c0_72, %c0_73] : memref<12x32x32xbf16, #tpu.memory_space<vmem>>, vector<1x32x32xbf16>
    %114 = vector.shape_cast %113 : vector<1x32x32xbf16> to vector<32x32xbf16>
    %115 = arith.truncf %112 : vector<64x32xf32> to vector<64x32xbf16>
    %cst_74 = arith.constant dense<0.000000e+00> : vector<64x32xf32>
    %116 = tpu.matmul %115, %114, %cst_74 {dimension_numbers = #tpu.dot_dimension_numbers<[1], [0], [0], [1], [0, 0, 1, 1], [], []>} : vector<64x32xbf16>, vector<32x32xbf16>, vector<64x32xf32> -> vector<64x32xf32>
    %c9_75 = arith.constant 9 : index
    %c0_76 = arith.constant 0 : index
    %c0_77 = arith.constant 0 : index
    %117 = vector.load %arg5[%c9_75, %c0_76, %c0_77] : memref<12x1x32xf32, #tpu.memory_space<vmem>>, vector<1x1x32xf32>
    %118 = vector.shape_cast %117 : vector<1x1x32xf32> to vector<1x32xf32>
    %119 = vector.broadcast %118 : vector<1x32xf32> to vector<64x32xf32>
    %120 = arith.addf %116, %119 : vector<64x32xf32>
    %cst_78 = arith.constant 0.000000e+00 : f32
    %121 = vector.broadcast %cst_78 : f32 to vector<64x32xf32>
    %122 = arith.maximumf %120, %121 : vector<64x32xf32>
    %123 = arith.addf %102, %122 : vector<64x32xf32>
    %c10 = arith.constant 10 : index
    %c0_79 = arith.constant 0 : index
    %c0_80 = arith.constant 0 : index
    %124 = vector.load %arg4[%c10, %c0_79, %c0_80] : memref<12x32x32xbf16, #tpu.memory_space<vmem>>, vector<1x32x32xbf16>
    %125 = vector.shape_cast %124 : vector<1x32x32xbf16> to vector<32x32xbf16>
    %126 = arith.truncf %123 : vector<64x32xf32> to vector<64x32xbf16>
    %cst_81 = arith.constant dense<0.000000e+00> : vector<64x32xf32>
    %127 = tpu.matmul %126, %125, %cst_81 {dimension_numbers = #tpu.dot_dimension_numbers<[1], [0], [0], [1], [0, 0, 1, 1], [], []>} : vector<64x32xbf16>, vector<32x32xbf16>, vector<64x32xf32> -> vector<64x32xf32>
    %c10_82 = arith.constant 10 : index
    %c0_83 = arith.constant 0 : index
    %c0_84 = arith.constant 0 : index
    %128 = vector.load %arg5[%c10_82, %c0_83, %c0_84] : memref<12x1x32xf32, #tpu.memory_space<vmem>>, vector<1x1x32xf32>
    %129 = vector.shape_cast %128 : vector<1x1x32xf32> to vector<1x32xf32>
    %130 = vector.broadcast %129 : vector<1x32xf32> to vector<64x32xf32>
    %131 = arith.addf %127, %130 : vector<64x32xf32>
    %cst_85 = arith.constant 0.000000e+00 : f32
    %132 = vector.broadcast %cst_85 : f32 to vector<64x32xf32>
    %133 = arith.maximumf %131, %132 : vector<64x32xf32>
    %c11 = arith.constant 11 : index
    %c0_86 = arith.constant 0 : index
    %c0_87 = arith.constant 0 : index
    %134 = vector.load %arg4[%c11, %c0_86, %c0_87] : memref<12x32x32xbf16, #tpu.memory_space<vmem>>, vector<1x32x32xbf16>
    %135 = vector.shape_cast %134 : vector<1x32x32xbf16> to vector<32x32xbf16>
    %136 = arith.truncf %133 : vector<64x32xf32> to vector<64x32xbf16>
    %cst_88 = arith.constant dense<0.000000e+00> : vector<64x32xf32>
    %137 = tpu.matmul %136, %135, %cst_88 {dimension_numbers = #tpu.dot_dimension_numbers<[1], [0], [0], [1], [0, 0, 1, 1], [], []>} : vector<64x32xbf16>, vector<32x32xbf16>, vector<64x32xf32> -> vector<64x32xf32>
    %c11_89 = arith.constant 11 : index
    %c0_90 = arith.constant 0 : index
    %c0_91 = arith.constant 0 : index
    %138 = vector.load %arg5[%c11_89, %c0_90, %c0_91] : memref<12x1x32xf32, #tpu.memory_space<vmem>>, vector<1x1x32xf32>
    %139 = vector.shape_cast %138 : vector<1x1x32xf32> to vector<1x32xf32>
    %140 = vector.broadcast %139 : vector<1x32xf32> to vector<64x32xf32>
    %141 = arith.addf %137, %140 : vector<64x32xf32>
    %cst_92 = arith.constant 0.000000e+00 : f32
    %142 = vector.broadcast %cst_92 : f32 to vector<64x32xf32>
    %143 = arith.maximumf %141, %142 : vector<64x32xf32>
    %144 = arith.addf %123, %143 : vector<64x32xf32>
    %145 = vector.extract_strided_slice %144 {offsets = [0, 0], sizes = [32, 32], strides = [1, 1]} : vector<64x32xf32> to vector<32x32xf32>
    %146 = vector.extract_strided_slice %144 {offsets = [32, 0], sizes = [32, 32], strides = [1, 1]} : vector<64x32xf32> to vector<32x32xf32>
    %147 = arith.addf %145, %146 : vector<32x32xf32>
    %cst_93 = arith.constant 5.000000e-01 : f32
    %148 = vector.broadcast %cst_93 : f32 to vector<32x32xf32>
    %149 = arith.mulf %148, %147 : vector<32x32xf32>
    %c0_94 = arith.constant 0 : index
    %c0_95 = arith.constant 0 : index
    %150 = vector.load %arg7[%c0_94, %c0_95] : memref<1x16xf32, #tpu.memory_space<vmem>>, vector<1x16xf32>
    %151 = vector.extract_strided_slice %149 {offsets = [0, 0], sizes = [16, 32], strides = [1, 1]} : vector<32x32xf32> to vector<16x32xf32>
    %c0_96 = arith.constant 0 : index
    %c0_97 = arith.constant 0 : index
    %c0_98 = arith.constant 0 : index
    %152 = vector.load %arg6[%c0_96, %c0_97, %c0_98] : memref<2x32x16xbf16, #tpu.memory_space<vmem>>, vector<1x32x16xbf16>
    %153 = vector.shape_cast %152 : vector<1x32x16xbf16> to vector<32x16xbf16>
    %154 = arith.truncf %151 : vector<16x32xf32> to vector<16x32xbf16>
    %cst_99 = arith.constant dense<0.000000e+00> : vector<16x16xf32>
    %155 = tpu.matmul %154, %153, %cst_99 {dimension_numbers = #tpu.dot_dimension_numbers<[1], [0], [0], [1], [0, 0, 1, 1], [], []>} : vector<16x32xbf16>, vector<32x16xbf16>, vector<16x16xf32> -> vector<16x16xf32>
    %156 = vector.broadcast %150 : vector<1x16xf32> to vector<16x16xf32>
    %157 = arith.addf %156, %155 : vector<16x16xf32>
    %158 = vector.extract_strided_slice %149 {offsets = [16, 0], sizes = [16, 32], strides = [1, 1]} : vector<32x32xf32> to vector<16x32xf32>
    %c1_100 = arith.constant 1 : index
    %c0_101 = arith.constant 0 : index
    %c0_102 = arith.constant 0 : index
    %159 = vector.load %arg6[%c1_100, %c0_101, %c0_102] : memref<2x32x16xbf16, #tpu.memory_space<vmem>>, vector<1x32x16xbf16>
    %160 = vector.shape_cast %159 : vector<1x32x16xbf16> to vector<32x16xbf16>
    %161 = arith.truncf %158 : vector<16x32xf32> to vector<16x32xbf16>
    %cst_103 = arith.constant dense<0.000000e+00> : vector<16x16xf32>
    %162 = tpu.matmul %161, %160, %cst_103 {dimension_numbers = #tpu.dot_dimension_numbers<[1], [0], [0], [1], [0, 0, 1, 1], [], []>} : vector<16x32xbf16>, vector<32x16xbf16>, vector<16x16xf32> -> vector<16x16xf32>
    %163 = arith.addf %157, %162 : vector<16x16xf32>
    %cst_104 = arith.constant 0.000000e+00 : f32
    %164 = vector.broadcast %cst_104 : f32 to vector<16x16xf32>
    %165 = arith.maximumf %163, %164 : vector<16x16xf32>
    %c0_105 = arith.constant 0 : index
    %c0_106 = arith.constant 0 : index
    %166 = vector.load %arg8[%c0_105, %c0_106] : memref<16x128xbf16, #tpu.memory_space<vmem>>, vector<16x128xbf16>
    %167 = arith.truncf %165 : vector<16x16xf32> to vector<16x16xbf16>
    %cst_107 = arith.constant dense<0.000000e+00> : vector<16x128xf32>
    %168 = tpu.matmul %167, %166, %cst_107 {dimension_numbers = #tpu.dot_dimension_numbers<[1], [0], [0], [1], [0, 0, 1, 1], [], []>} : vector<16x16xbf16>, vector<16x128xbf16>, vector<16x128xf32> -> vector<16x128xf32>
    %c0_108 = arith.constant 0 : index
    %c0_109 = arith.constant 0 : index
    %169 = vector.load %arg9[%c0_108, %c0_109] : memref<1x128xf32, #tpu.memory_space<vmem>>, vector<1x128xf32>
    %170 = vector.broadcast %169 : vector<1x128xf32> to vector<16x128xf32>
    %171 = arith.addf %168, %170 : vector<16x128xf32>
    %c0_110 = arith.constant 0 : index
    %c0_111 = arith.constant 0 : index
    %172 = vector.load %arg10[%c0_110, %c0_111] : memref<16x128xf32, #tpu.memory_space<vmem>>, vector<16x128xf32>
    tpu.vector_store %arg10[%c0_110, %c0_111], %171 {strides = array<i32>} : memref<16x128xf32, #tpu.memory_space<vmem>>, vector<16x128xf32>,
    return
  }
  func.func @transform_0(%arg0: i32) -> (i32, i32) {
    %c0_i32 = arith.constant 0 : i32
    %c0_i32_0 = arith.constant 0 : i32
    return %arg0, %c0_i32 : i32, i32
  }
  func.func @transform_1(%arg0: i32) -> (i32, i32) {
    %c0_i32 = arith.constant 0 : i32
    %c0_i32_0 = arith.constant 0 : i32
    %c0_i32_1 = arith.constant 0 : i32
    return %c0_i32, %c0_i32_0 : i32, i32
  }
  func.func @transform_2(%arg0: i32) -> (i32, i32) {
    %c0_i32 = arith.constant 0 : i32
    %c0_i32_0 = arith.constant 0 : i32
    %c0_i32_1 = arith.constant 0 : i32
    return %c0_i32, %c0_i32_0 : i32, i32
  }
  func.func @transform_3(%arg0: i32) -> (i32, i32, i32) {
    %c0_i32 = arith.constant 0 : i32
    %c0_i32_0 = arith.constant 0 : i32
    %c0_i32_1 = arith.constant 0 : i32
    %c0_i32_2 = arith.constant 0 : i32
    return %c0_i32, %c0_i32_0, %c0_i32_1 : i32, i32, i32
  }
  func.func @transform_4(%arg0: i32) -> (i32, i32, i32) {
    %c0_i32 = arith.constant 0 : i32
    %c0_i32_0 = arith.constant 0 : i32
    %c0_i32_1 = arith.constant 0 : i32
    %c0_i32_2 = arith.constant 0 : i32
    return %c0_i32, %c0_i32_0, %c0_i32_1 : i32, i32, i32
  }
  func.func @transform_5(%arg0: i32) -> (i32, i32, i32) {
    %c0_i32 = arith.constant 0 : i32
    %c0_i32_0 = arith.constant 0 : i32
    %c0_i32_1 = arith.constant 0 : i32
    %c0_i32_2 = arith.constant 0 : i32
    return %c0_i32, %c0_i32_0, %c0_i32_1 : i32, i32, i32
  }
  func.func @transform_6(%arg0: i32) -> (i32, i32) {
    %c0_i32 = arith.constant 0 : i32
    %c0_i32_0 = arith.constant 0 : i32
    %c0_i32_1 = arith.constant 0 : i32
    return %c0_i32, %c0_i32_0 : i32, i32
  }
  func.func @transform_7(%arg0: i32) -> (i32, i32) {
    %c0_i32 = arith.constant 0 : i32
    %c0_i32_0 = arith.constant 0 : i32
    %c0_i32_1 = arith.constant 0 : i32
    return %c0_i32, %c0_i32_0 : i32, i32
  }
  func.func @transform_8(%arg0: i32) -> (i32, i32) {
    %c0_i32 = arith.constant 0 : i32
    %c0_i32_0 = arith.constant 0 : i32
    %c0_i32_1 = arith.constant 0 : i32
    return %c0_i32, %c0_i32_0 : i32, i32
  }
  func.func @transform_9(%arg0: i32) -> (i32, i32) {
    %c0_i32 = arith.constant 0 : i32
    %c0_i32_0 = arith.constant 0 : i32
    return %arg0, %c0_i32 : i32, i32
  }
}

</mosaic_0001>

<bundles_post_ra>
// kernel: tpu_custom_call.1
= control target key start
LH: loop header
LB: loop body
LE: loop exit
PB: predicated region body
PF: predicated region fallthrough
CT: control target
= control target key end

     0   :  { %14 = vsyncpa [#allocation3], 0  ;;  %s5436_s0 = inlined_call_operand.vmem [shape: f32[512,16], index: 0, kind: input, shape index: {}]   ;;  %s5437_s1 = inlined_call_operand.vmem [shape: bf16[16,32], index: 1, kind: input, shape index: {}]   ;;  %s5438_s2 = inlined_call_operand.vmem [shape: f32[1,32], index: 2, kind: input, shape index: {}]   ;;  %s5439_s3 = inlined_call_operand.vmem [shape: bf16[12,32,32], index: 3, kind: input, shape index: {}]   ;;  %s5440_s4 = inlined_call_operand.vmem [shape: f32[12,1,32], index: 4, kind: input, shape index: {}]   ;;  %s5441_s5 = inlined_call_operand.vmem [shape: bf16[2,32,16], index: 5, kind: input, shape index: {}]   ;;  %s5442_s6 = inlined_call_operand.vmem [shape: f32[1,16], index: 6, kind: input, shape index: {}]   ;;  %s5443_s7 = inlined_call_operand.vmem [shape: bf16[16,128], index: 7, kind: input, shape index: {}]   ;;  %s5444_s8 = inlined_call_operand.vmem [shape: f32[1,128], index: 8, kind: input, shape index: {}]   ;;  %s5445_s9 = inlined_call_operand.hbm [shape: f32[32,128], index: 9, kind: output, shape index: {}]  }
   0x1   :  { %16 = vsyncpa [#allocation3 + $0x1], 0  ;;  %s4280_s30 = smov 0   ;;  %s4282_s10 = smov 0  }
   0x2   :  { %s4284_s11 = smov 0   ;;  %s4286_s12 = smov 0  }
   0x3 LB: > { %s4301_s13 = sadd.s32 4294967295, %s4223_s12   ;;  %s3345_s14 = sadd.s32 4294967294, %s4223_s12   ;;  %s4223_s12 = sphi %s4286_s12, %s5495_s12   ;;  %s4219_s11 = sphi %s4284_s11, %s5494_s11   ;;  %s4215_s10 = sphi %s4282_s10, %s5493_s10   ;;  %s4211_s30 = sphi %s4280_s30, %s5492_s30  }
   0x4   : > { %s4305_s15 = sadd.s32 1, %s4223_s12   ;;  %s223_s16 = sadd.s32 1, %s4219_s11 }
   0x5   : > { %s220_s17 = ssub.s32 %s4223_s12, %s4305_s15  ;;  %p233_p0 = scmp.ne.s32.totalorder %s4219_s11, %s4215_s10 }
   0x6   : > { %p221_p1 = scmp.eq.s32.totalorder %s220_s17, 0  ;;  %p234_p2 = scmp.eq.s32.totalorder %s4301_s13, 1 }
   0x7   : > { %p239_p3 = scmp.ne.s32.totalorder %s4215_s10, %s4211_s30  ;;  %p240_p4 = scmp.eq.s32.totalorder %s3345_s14, 1 }
   0x8   : > { %s4316_s18 = scalar_select %p221_p1, %s4219_s11, %s223_s16  }
   0x9   : > { %p4318_p5 = por %p234_p2, %p233_p0  ;;  %p4322_p6 = por %p240_p4, %p239_p3 }
   0xa   : > { %p3348_p7 = scmp.ge.s32.totalorder %s4223_s12, 1  ;;  %p291_p8 = scmp.lt.s32.totalorder %s4223_s12, 3 }
   0xc   : > { %p292_p9 = pnand %p3348_p7, %p291_p8 }
   0xe   : > { %295 = sbr.rel (%p292_p9) target bundleno = 3459 (0xd83), region = 56 }
  0x15   : > { %v4131_v0 = vld [vmem:[%s5437_s1] sm:$0xff]   ;;  %s3350_s23 = sshll.u32 %s4301_s13, 5  ;;  %vm398_vm0 = vcmask 130048   ;;  %v4133_v50 = vld [vmem:[%s5439_s3 + $0x8] sm:$0xff]   ;;  %v4134_v51 = vld [vmem:[%s5439_s3 + $0x10] sm:$0xff]   ;;  %vm679_vm1 = vcmask 261120  }
  0x16   : > { %p328_p10 = scmp.lt.s32.totalorder %s3350_s23, 63  ;;  %3754 = vmatprep.subr.bf16.mxu0 %v4131_v0  ;;  %v4132_v49 = vld [vmem:[%s5439_s3] sm:$0xff]   ;;  %v4135_v52 = vld [vmem:[%s5439_s3 + $0x18] sm:$0xff]   ;;  %vm4226_vm2 = vmmov 0   ;;  %s324_s14 = sand.u32 1, %s4215_s10  }
  0x17   : > { %3755 = vmatpush3.bf16.msra.mxu0 %v4131_v0  ;;  %3788 = vmatprep.subr.bf16.mxu1 %v4132_v49  ;;  %v4400_v53 = vld [vmem:[%s5438_s2] ss:$0 sm:$0xff]  ;;  %s3349_s16 = sshll.u32 %s324_s14, 4  ;;  %s5395_s28 = scalar_lea.sflag [#allocation3], %s324_s14 }
  0x18   : > { %s5497_s23 = smov (!%p328_p10, %s3350_s23), 63  ;;  %3789 = vmatpush3.bf16.msra.mxu1 %v4132_v49  ;;  %3824 = vmatprep.subr.bf16.mxu0 %v4134_v51  ;;  %s326_s22 = scalar_lea.vmem [#allocation2], %s3349_s16 }
  0x19   : > { %s3351_s24 = sshll.u32 %s5497_s23, 3  ;;  %3790 = vmatprep.subr.bf16.mxu1 %v4133_v50  ;;  %s3283_s23 = sshll.u32 %s326_s22, 4  ;;  %s5388_s23 = int_to_ptr.vmem [resolvable:$true] %s3283_s23 }
  0x1a   : > { %s4335_s27 = scalar_lea.vmem %s5436_s0, %s3351_s24  ;;  %s3592_s24 = sshll.u32 %s4301_s13, 8 }
  0x1b   : > { %v335_v1 = vld [vmem:[%s4335_s27] sm:$0xff]  ;;  %v336_v2 = vld [vmem:[%s4335_s27 + $0x8] sm:$0xff]  ;;  %v337_v3 = vld [vmem:[%s4335_s27 + $0x10] sm:$0xff]  ;;  %s4161_s13 = scalar_lea.vmem %s5388_s23, 256  ;;  %s4227_s29 = smov [#allocation2]  }
  0x1c   : > { %v369_v4 = vpack.c.bf16 %v336_v2, %v335_v1  ;;  %v338_v5 = vld [vmem:[%s4335_s27 + $0x18] sm:$0xff]  ;;  %v339_v6 = vld [vmem:[%s4335_s27 + $0x20] sm:$0xff]  ;;  %v340_v7 = vld [vmem:[%s4335_s27 + $0x28] sm:$0xff]  ;;  %3791 = vmatpush3.bf16.msra.mxu1 %v4133_v50  ;;  %p4162_p11 = scmp.ne.s32.totalorder %s5388_s23, %s4161_s13  ;;  %s4165_s16 = sshll.u32 %s4227_s29, 4  ;;  %s4166_s16 = int_to_ptr.vmem [resolvable:$false] %s4165_s16 }
  0x1d   : > { %v370_v8 = vpack.c.bf16 %v338_v5, %v337_v3  ;;  %v371_v9 = vpack.c.bf16 %v340_v7, %v339_v6  ;;  %v341_v10 = vld [vmem:[%s4335_s27 + $0x30] sm:$0xff]  ;;  %v342_v11 = vld [vmem:[%s4335_s27 + $0x38] sm:$0xff]  ;;  %v343_v12 = vld [vmem:[%s4335_s27 + $0x40] sm:$0xff]  ;;  %s4167_s17 = scalar_lea.vmem %s4166_s16, 512  ;;  %p4168_p0 = scmp.lt.s32.totalorder %s5388_s23, %s4166_s16 }
  0x1e   : > { %3756 = vmatprep.mubr.msk.bf16.mxu0 %vm398_vm0, %v369_v4  ;;  %v344_v13 = vld [vmem:[%s4335_s27 + $0x48] sm:$0xff]  ;;  %v372_v14 = vpack.c.bf16 %v342_v11, %v341_v10  ;;  %v345_v16 = vld [vmem:[%s4335_s27 + $0x50] sm:$0xff]  ;;  %v346_v17 = vld [vmem:[%s4335_s27 + $0x58] sm:$0xff]  ;;  %p4163_p12 = pnand %p4162_p11, %p4318_p5  ;;  %p4169_p1 = scmp.lt.s32.totalorder %s4167_s17, %s4161_s13 }
  0x1f   : > { %3757 = vmatmul.mubr.msk.bf16.vlgmr.msra.gmra.mrb[0].mxu0 %vm398_vm0, %v370_v8  ;;  %v373_v15 = vpack.c.bf16 %v344_v13, %v343_v12  ;;  %v347_v18 = vld [vmem:[%s4335_s27 + $0x60] sm:$0xff]  ;;  %v348_v19 = vld [vmem:[%s4335_s27 + $0x68] sm:$0xff]  ;;  %v374_v20 = vpack.c.bf16 %v346_v17, %v345_v16  ;;  %v349_v22 = vld [vmem:[%s4335_s27 + $0x70] sm:$0xff] }
  0x20   : > { %3760 = vmatprep.mubr.msk.bf16.mxu0 %vm398_vm0, %v371_v9  ;;  %v375_v21 = vpack.c.bf16 %v348_v19, %v347_v18  ;;  %v350_v23 = vld [vmem:[%s4335_s27 + $0x78] sm:$0xff]  ;;  %v351_v24 = vld [vmem:[%s4335_s27 + $0x80] sm:$0xff]  ;;  %v352_v25 = vld [vmem:[%s4335_s27 + $0x88] sm:$0xff]  ;;  %3825 = vmatpush3.bf16.msra.mxu0 %v4134_v51  ;;  %p4164_p13 = pneg %p4163_p12  ;;  %p4170_p2 = por %p4169_p1, %p4168_p0 }
  0x21   : > { %v376_v26 = vpack.c.bf16 %v350_v23, %v349_v22  ;;  %v377_v27 = vpack.c.bf16 %v352_v25, %v351_v24  ;;  %v353_v28 = vld [vmem:[%s4335_s27 + $0x90] sm:$0xff]  ;;  %v354_v29 = vld [vmem:[%s4335_s27 + $0x98] sm:$0xff]  ;;  %v355_v30 = vld [vmem:[%s4335_s27 + $0xa0] sm:$0xff]  ;;  %3826 = vmatprep.subr.bf16.mxu0 %v4135_v52 }
  0x22   : > { %v356_v31 = vld [vmem:[%s4335_s27 + $0xa8] sm:$0xff]  ;;  %v378_v32 = vpack.c.bf16 %v354_v29, %v353_v28  ;;  %v357_v34 = vld [vmem:[%s4335_s27 + $0xb0] sm:$0xff]  ;;  %v358_v35 = vld [vmem:[%s4335_s27 + $0xb8] sm:$0xff]  ;;  %p4171_p3 = pnand %p4170_p2, %p4164_p13 }
  0x23   : > { %v379_v33 = vpack.c.bf16 %v356_v31, %v355_v30  ;;  %v359_v36 = vld [vmem:[%s4335_s27 + $0xc0] sm:$0xff]  ;;  %v360_v37 = vld [vmem:[%s4335_s27 + $0xc8] sm:$0xff]  ;;  %v380_v38 = vpack.c.bf16 %v358_v35, %v357_v34  ;;  %v361_v40 = vld [vmem:[%s4335_s27 + $0xd0] sm:$0xff] }
  0x24   : > { %v381_v39 = vpack.c.bf16 %v360_v37, %v359_v36  ;;  %v362_v41 = vld [vmem:[%s4335_s27 + $0xd8] sm:$0xff]  ;;  %v363_v42 = vld [vmem:[%s4335_s27 + $0xe0] sm:$0xff]  ;;  %v364_v43 = vld [vmem:[%s4335_s27 + $0xe8] sm:$0xff]  ;;  %3827 = vmatpush3.bf16.msra.mxu0 %v4135_v52 }
  0x25   : > { %v382_v44 = vpack.c.bf16 %v362_v41, %v361_v40  ;;  %v383_v45 = vpack.c.bf16 %v364_v43, %v363_v42  ;;  %v365_v46 = vld [vmem:[%s4335_s27 + $0xf0] sm:$0xff]  ;;  %v366_v47 = vld [vmem:[%s4335_s27 + $0xf8] sm:$0xff]  ;;  %s5393_s27 = scalar_lea.hbm %s5445_s9, %s3592_s24 }
  0x26   : > { %v384_v48 = vpack.c.bf16 %v366_v47, %v365_v46 }
  0x27   : > { %3761 = vmatmul.mubr.msk.bf16.gmra.mrb[4].mxu0 %vm398_vm0, %v372_v14 }
  0x28   : > { %3764 = vmatprep.mubr.msk.bf16.mxu0 %vm398_vm0, %v373_v15 }
  0x2f   : > { %3765 = vmatmul.mubr.msk.bf16.gmra.mrb[8].mxu0 %vm398_vm0, %v374_v20 }
  0x30   : > { %3768 = vmatprep.mubr.msk.bf16.mxu0 %vm398_vm0, %v375_v21 }
  0x37   : > { %3769 = vmatmul.mubr.msk.bf16.gmra.mrb[12].mxu0 %vm398_vm0, %v376_v26 }
  0x38   : > { %3772 = vmatprep.mubr.msk.bf16.mxu0 %vm398_vm0, %v377_v27 }
  0x3f   : > { %3773 = vmatmul.mubr.msk.bf16.gmra.mrb[16].mxu0 %vm398_vm0, %v378_v32 }
  0x40   : > { %3776 = vmatprep.mubr.msk.bf16.mxu0 %vm398_vm0, %v379_v33 }
  0x47   : > { %3777 = vmatmul.mubr.msk.bf16.gmra.mrb[20].mxu0 %vm398_vm0, %v380_v38 }
  0x48   : > { %3780 = vmatprep.mubr.msk.bf16.mxu0 %vm398_vm0, %v381_v39 }
  0x4f   : > { %3781 = vmatmul.mubr.msk.bf16.gmra.mrb[24].mxu0 %vm398_vm0, %v382_v44 }
  0x50   : > { %3784 = vmatprep.mubr.msk.bf16.mxu0 %vm398_vm0, %v383_v45 }
  0x57   : > { %3785 = vmatmul.mubr.msk.bf16.gmra.mrb[28].mxu0 %vm398_vm0, %v384_v48 }
  0xf2   : > { %v3758_v54 = vpop.f32.mrb[0].mxu0 }
  0xf3   : > { %v481_v55 = vpop.f32.mrb[1].mxu0  ;;  %v4406_v58 = vadd.f32 %v3758_v54, %v4400_v53 }
  0xf4   : > { %v4403_v56 = vadd.f32 %v4400_v53, %v481_v55  ;;  %v3759_v57 = vpop.f32.mrb[2].mxu0 }
  0xf5   : > { %v4409_v59 = vadd.f32 %v3759_v57, %v4400_v53  ;;  %v484_v60 = vpop.f32.mrb[3].mxu0  ;;  %v610_v1 = vmax.f32 %v4406_v58, 0.0 }
  0xf6   : > { %v4412_v61 = vadd.f32 %v4400_v53, %v484_v60  ;;  %v608_v63 = vmax.f32 %v4403_v56, 0.0 }
  0xf7   : > { %v611_v62 = vmax.f32 %v4409_v59, 0.0 }
  0xf8   : > { %v609_v0 = vmax.f32 %v4412_v61, 0.0 }
  0xf9   : > { %v645_v4 = vpack.c.bf16 %v611_v62, %v610_v1 }
  0xfa   : > { %v3762_v2 = vpop.f32.mrb[4].mxu0  ;;  %v644_v3 = vpack.c.bf16 %v609_v0, %v608_v63 }
  0xfb   : > { %v497_v5 = vpop.f32.mrb[5].mxu0  ;;  %v4431_v8 = vadd.f32 %v3762_v2, %v4400_v53 }
  0xfc   : > { %v4427_v6 = vadd.f32 %v4400_v53, %v497_v5  ;;  %v3763_v7 = vpop.f32.mrb[6].mxu0  ;;  %3792 = vmatprep.mubr.msk.bf16.mxu1 %vm679_vm1, %v644_v3 }
  0xfd   : > { %v4434_v9 = vadd.f32 %v3763_v7, %v4400_v53  ;;  %v500_v10 = vpop.f32.mrb[7].mxu0  ;;  %3793 = vmatmul.mubr.msk.bf16.vlgmr.msra.gmra.mrb[0].mxu1 %vm679_vm1, %v645_v4  ;;  %v614_v15 = vmax.f32 %v4431_v8, 0.0 }
  0xfe   : > { %v4438_v11 = vadd.f32 %v4400_v53, %v500_v10  ;;  %v612_v13 = vmax.f32 %v4427_v6, 0.0 }
  0xff   : > { %v615_v12 = vmax.f32 %v4434_v9, 0.0 }
 0x100   : > { %v613_v14 = vmax.f32 %v4438_v11, 0.0 }
 0x101   : > { %v647_v18 = vpack.c.bf16 %v615_v12, %v614_v15 }
 0x102   : > { %v646_v16 = vpack.c.bf16 %v613_v14, %v612_v13  ;;  %v3766_v17 = vpop.f32.mrb[8].mxu0 }
 0x103   : > { %v513_v19 = vpop.f32.mrb[9].mxu0  ;;  %v4457_v22 = vadd.f32 %v3766_v17, %v4400_v53 }
 0x104   : > { %v4453_v20 = vadd.f32 %v4400_v53, %v513_v19  ;;  %v3767_v21 = vpop.f32.mrb[10].mxu0  ;;  %3796 = vmatprep.mubr.msk.bf16.mxu1 %vm679_vm1, %v646_v16 }
 0x105   : > { %v4460_v23 = vadd.f32 %v3767_v21, %v4400_v53  ;;  %v516_v24 = vpop.f32.mrb[11].mxu0  ;;  %3797 = vmatmul.mubr.msk.bf16.gmra.mrb[4].mxu1 %vm679_vm1, %v647_v18  ;;  %v618_v29 = vmax.f32 %v4457_v22, 0.0 }
 0x106   : > { %v4464_v25 = vadd.f32 %v4400_v53, %v516_v24  ;;  %v616_v27 = vmax.f32 %v4453_v20, 0.0 }
 0x107   : > { %v619_v26 = vmax.f32 %v4460_v23, 0.0 }
 0x108   : > { %v617_v28 = vmax.f32 %v4464_v25, 0.0 }
 0x109   : > { %v649_v32 = vpack.c.bf16 %v619_v26, %v618_v29 }
 0x10a   : > { %v648_v30 = vpack.c.bf16 %v617_v28, %v616_v27  ;;  %v3770_v31 = vpop.f32.mrb[12].mxu0 }
 0x10b   : > { %v529_v33 = vpop.f32.mrb[13].mxu0  ;;  %v4483_v36 = vadd.f32 %v3770_v31, %v4400_v53 }
 0x10c   : > { %v4479_v34 = vadd.f32 %v4400_v53, %v529_v33  ;;  %v3771_v35 = vpop.f32.mrb[14].mxu0  ;;  %3800 = vmatprep.mubr.msk.bf16.mxu1 %vm679_vm1, %v648_v30 }
 0x10d   : > { %v4486_v37 = vadd.f32 %v3771_v35, %v4400_v53  ;;  %v532_v38 = vpop.f32.mrb[15].mxu0  ;;  %3801 = vmatmul.mubr.msk.bf16.gmra.mrb[8].mxu1 %vm679_vm1, %v649_v32  ;;  %v5462_v43 = vmax.f32 %v4483_v36, 0.0 }
 0x10e   : > { %v4490_v39 = vadd.f32 %v4400_v53, %v532_v38  ;;  %v5464_v41 = vmax.f32 %v4479_v34, 0.0 }
 0x10f   : > { %v623_v40 = vmax.f32 %v4486_v37, 0.0 }
 0x110   : > { %v5463_v42 = vmax.f32 %v4490_v39, 0.0 }
 0x111   : > { %v651_v46 = vpack.c.bf16 %v623_v40, %v5462_v43 }
 0x112   : > { %v650_v44 = vpack.c.bf16 %v5463_v42, %v5464_v41  ;;  %v3774_v45 = vpop.f32.mrb[16].mxu0 }
 0x113   : > { %v545_v47 = vpop.f32.mrb[17].mxu0  ;;  %v4509_v50 = vadd.f32 %v3774_v45, %v4400_v53 }
 0x114   : > { %v4505_v48 = vadd.f32 %v4400_v53, %v545_v47  ;;  %v3775_v49 = vpop.f32.mrb[18].mxu0  ;;  %3804 = vmatprep.mubr.msk.bf16.mxu1 %vm679_vm1, %v650_v44 }
 0x115   : > { %v4512_v51 = vadd.f32 %v3775_v49, %v4400_v53  ;;  %v548_v52 = vpop.f32.mrb[19].mxu0  ;;  %3805 = vmatmul.mubr.msk.bf16.gmra.mrb[12].mxu1 %vm679_vm1, %v651_v46  ;;  %v5458_v2 = vmax.f32 %v4509_v50, 0.0 }
 0x116   : > { %v4516_v54 = vadd.f32 %v4400_v53, %v548_v52  ;;  %v5460_v57 = vmax.f32 %v4505_v48, 0.0 }
 0x117   : > { %v5461_v55 = vmax.f32 %v4512_v51, 0.0 }
 0x118   : > { %v5459_v60 = vmax.f32 %v4516_v54, 0.0 }
 0x119   : > { %v653_v5 = vpack.c.bf16 %v5461_v55, %v5458_v2 }
 0x11a   : > { %v652_v3 = vpack.c.bf16 %v5459_v60, %v5460_v57  ;;  %v3778_v4 = vpop.f32.mrb[20].mxu0 }
 0x11b   : > { %v561_v7 = vpop.f32.mrb[21].mxu0  ;;  %v4535_v17 = vadd.f32 %v3778_v4, %v4400_v53 }
 0x11c   : > { %v4531_v10 = vadd.f32 %v4400_v53, %v561_v7  ;;  %v3779_v16 = vpop.f32.mrb[22].mxu0  ;;  %3808 = vmatprep.mubr.msk.bf16.mxu1 %vm679_vm1, %v652_v3 }
 0x11d   : > { %v4538_v18 = vadd.f32 %v3779_v16, %v4400_v53  ;;  %v564_v19 = vpop.f32.mrb[23].mxu0  ;;  %3809 = vmatmul.mubr.msk.bf16.gmra.mrb[16].mxu1 %vm679_vm1, %v653_v5  ;;  %v5446_v32 = vmax.f32 %v4535_v17, 0.0 }
 0x11e   : > { %v4542_v21 = vadd.f32 %v4400_v53, %v564_v19  ;;  %v5456_v30 = vmax.f32 %v4531_v10, 0.0 }
 0x11f   : > { %v5457_v24 = vmax.f32 %v4538_v18, 0.0 }
 0x120   : > { %v5455_v31 = vmax.f32 %v4542_v21, 0.0 }
 0x121   : > { %v655_v38 = vpack.c.bf16 %v5457_v24, %v5446_v32 }
 0x122   : > { %v654_v33 = vpack.c.bf16 %v5455_v31, %v5456_v30  ;;  %v3782_v35 = vpop.f32.mrb[24].mxu0 }
 0x123   : > { %v577_v44 = vpop.f32.mrb[25].mxu0  ;;  %v4561_v47 = vadd.f32 %v3782_v35, %v4400_v53 }
 0x124   : > { %v4557_v45 = vadd.f32 %v4400_v53, %v577_v44  ;;  %v3783_v46 = vpop.f32.mrb[26].mxu0  ;;  %3812 = vmatprep.mubr.msk.bf16.mxu1 %vm679_vm1, %v654_v33 }
 0x125   : > { %v4564_v49 = vadd.f32 %v3783_v46, %v4400_v53  ;;  %v580_v52 = vpop.f32.mrb[27].mxu0  ;;  %3813 = vmatmul.mubr.msk.bf16.gmra.mrb[20].mxu1 %vm679_vm1, %v655_v38  ;;  %v5449_v16 = vmax.f32 %v4561_v47, 0.0 }
 0x126   : > { %v4568_v3 = vadd.f32 %v4400_v53, %v580_v52  ;;  %v5448_v5 = vmax.f32 %v4557_v45, 0.0 }
 0x127   : > { %v5450_v4 = vmax.f32 %v4564_v49, 0.0 }
 0x128   : > { %v5447_v7 = vmax.f32 %v4568_v3, 0.0 }
 0x129   : > { %v657_v35 = vpack.c.bf16 %v5450_v4, %v5449_v16 }
 0x12a   : > { %v656_v19 = vpack.c.bf16 %v5447_v7, %v5448_v5  ;;  %v3786_v33 = vpop.f32.mrb[28].mxu0 }
 0x12b   : > { %v593_v38 = vpop.f32.mrb[29].mxu0  ;;  %v4587_v52 = vadd.f32 %v3786_v33, %v4400_v53 }
 0x12c   : > { %v4583_v44 = vadd.f32 %v4400_v53, %v593_v38  ;;  %v3787_v46 = vpop.f32.mrb[30].mxu0  ;;  %3816 = vmatprep.mubr.msk.bf16.mxu1 %vm679_vm1, %v656_v19 }
 0x12d   : > { %v4590_v32 = vadd.f32 %v3787_v46, %v4400_v53  ;;  %v596_v7 = vpop.f32.mrb[31].mxu0  ;;  %3817 = vmatmul.mubr.msk.bf16.gmra.mrb[24].mxu1 %vm679_vm1, %v657_v35  ;;  %v5451_v19 = vmax.f32 %v4587_v52, 0.0  ;;  %v4619_v46 = vld [vmem:[%s5440_s4] ss:$0 sm:$0xff] }
 0x12e   : > { %v4594_v5 = vadd.f32 %v4400_v53, %v596_v7  ;;  %v5453_v38 = vmax.f32 %v4583_v44, 0.0  ;;  %v4136_v53 = vld [vmem:[%s5439_s3 + $0x20] sm:$0xff]   ;;  %v4137_v7 = vld [vmem:[%s5439_s3 + $0x28] sm:$0xff]  }
 0x12f   : > { %v5454_v16 = vmax.f32 %v4590_v32, 0.0  ;;  %3860 = vmatprep.subr.bf16.mxu1 %v4136_v53 }
 0x130   : > { %v5452_v4 = vmax.f32 %v4594_v5, 0.0  ;;  %3861 = vmatpush3.bf16.msra.mxu1 %v4136_v53 }
 0x131   : > { %v659_v35 = vpack.c.bf16 %v5454_v16, %v5451_v19  ;;  %3862 = vmatprep.subr.bf16.mxu1 %v4137_v7 }
 0x132   : > { %v658_v33 = vpack.c.bf16 %v5452_v4, %v5453_v38 }
 0x134   : > { %3820 = vmatprep.mubr.msk.bf16.mxu1 %vm679_vm1, %v658_v33  ;;  %3863 = vmatpush3.bf16.msra.mxu1 %v4137_v7 }
 0x135   : > { %3821 = vmatmul.mubr.msk.bf16.gmra.mrb[28].mxu1 %vm679_vm1, %v659_v35 }
 0x1d0   : > { %v3794_v33 = vpop.f32.mrb[0].mxu1 }
 0x1d1   : > { %v771_v35 = vadd.f32 %v3794_v33, %v4619_v46  ;;  %v762_v19 = vpop.f32.mrb[1].mxu1 }
 0x1d2   : > { %v763_v4 = vadd.f32 %v4619_v46, %v762_v19  ;;  %v3795_v38 = vpop.f32.mrb[2].mxu1 }
 0x1d3   : > { %v774_v16 = vadd.f32 %v3795_v38, %v4619_v46  ;;  %v765_v31 = vpop.f32.mrb[3].mxu1  ;;  %v891_v53 = vmax.f32 %v771_v35, 0.0 }
 0x1d4   : > { %v766_v30 = vadd.f32 %v4619_v46, %v765_v31  ;;  %v889_v7 = vmax.f32 %v763_v4, 0.0 }
 0x1d5   : > { %v892_v24 = vmax.f32 %v774_v16, 0.0 }
 0x1d6   : > { %v890_v2 = vmax.f32 %v766_v30, 0.0 }
 0x1d7   : > { %v927_v60 = vpack.c.bf16 %v892_v24, %v891_v53 }
 0x1d8   : > { %v926_v57 = vpack.c.bf16 %v890_v2, %v889_v7  ;;  %v3798_v55 = vpop.f32.mrb[4].mxu1 }
 0x1d9   : > { %v787_v43 = vadd.f32 %v3798_v55, %v4619_v46  ;;  %v778_v42 = vpop.f32.mrb[5].mxu1 }
 0x1da   : > { %v779_v33 = vadd.f32 %v4619_v46, %v778_v42  ;;  %v3799_v41 = vpop.f32.mrb[6].mxu1  ;;  %3828 = vmatprep.mubr.msk.bf16.mxu0 %vm679_vm1, %v926_v57 }
 0x1db   : > { %v790_v38 = vadd.f32 %v3799_v41, %v4619_v46  ;;  %v781_v19 = vpop.f32.mrb[7].mxu1  ;;  %3829 = vmatmul.mubr.msk.bf16.vlgmr.msra.gmra.mrb[32].mxu0 %vm679_vm1, %v927_v60  ;;  %v895_v4 = vmax.f32 %v787_v43, 0.0 }
 0x1dc   : > { %v782_v31 = vadd.f32 %v4619_v46, %v781_v19  ;;  %v893_v24 = vmax.f32 %v779_v33, 0.0 }
 0x1dd   : > { %v896_v30 = vmax.f32 %v790_v38, 0.0 }
 0x1de   : > { %v894_v2 = vmax.f32 %v782_v31, 0.0 }
 0x1df   : > { %v929_v16 = vpack.c.bf16 %v896_v30, %v895_v4 }
 0x1e0   : > { %v928_v35 = vpack.c.bf16 %v894_v2, %v893_v24  ;;  %v3802_v55 = vpop.f32.mrb[8].mxu1 }
 0x1e1   : > { %v803_v53 = vadd.f32 %v3802_v55, %v4619_v46  ;;  %v794_v42 = vpop.f32.mrb[9].mxu1 }
 0x1e2   : > { %v795_v7 = vadd.f32 %v4619_v46, %v794_v42  ;;  %v3803_v57 = vpop.f32.mrb[10].mxu1  ;;  %3832 = vmatprep.mubr.msk.bf16.mxu0 %vm679_vm1, %v928_v35 }
 0x1e3   : > { %v806_v41 = vadd.f32 %v3803_v57, %v4619_v46  ;;  %v797_v60 = vpop.f32.mrb[11].mxu1  ;;  %3833 = vmatmul.mubr.msk.bf16.gmra.mrb[36].mxu0 %vm679_vm1, %v929_v16  ;;  %v899_v33 = vmax.f32 %v803_v53, 0.0 }
 0x1e4   : > { %v798_v43 = vadd.f32 %v4619_v46, %v797_v60  ;;  %v897_v19 = vmax.f32 %v795_v7, 0.0 }
 0x1e5   : > { %v900_v38 = vmax.f32 %v806_v41, 0.0 }
 0x1e6   : > { %v898_v31 = vmax.f32 %v798_v43, 0.0 }
 0x1e7   : > { %v931_v4 = vpack.c.bf16 %v900_v38, %v899_v33 }
 0x1e8   : > { %v930_v30 = vpack.c.bf16 %v898_v31, %v897_v19  ;;  %v3806_v24 = vpop.f32.mrb[12].mxu1 }
 0x1e9   : > { %v819_v2 = vadd.f32 %v3806_v24, %v4619_v46  ;;  %v810_v55 = vpop.f32.mrb[13].mxu1 }
 0x1ea   : > { %v811_v42 = vadd.f32 %v4619_v46, %v810_v55  ;;  %v3807_v35 = vpop.f32.mrb[14].mxu1  ;;  %3836 = vmatprep.mubr.msk.bf16.mxu0 %vm679_vm1, %v930_v30 }
 0x1eb   : > { %v822_v57 = vadd.f32 %v3807_v35, %v4619_v46  ;;  %v813_v16 = vpop.f32.mrb[15].mxu1  ;;  %3837 = vmatmul.mubr.msk.bf16.gmra.mrb[40].mxu0 %vm679_vm1, %v931_v4  ;;  %v903_v7 = vmax.f32 %v819_v2, 0.0 }
 0x1ec   : > { %v814_v53 = vadd.f32 %v4619_v46, %v813_v16  ;;  %v901_v60 = vmax.f32 %v811_v42, 0.0 }
 0x1ed   : > { %v904_v41 = vmax.f32 %v822_v57, 0.0 }
 0x1ee   : > { %v902_v43 = vmax.f32 %v814_v53, 0.0 }
 0x1ef   : > { %v933_v33 = vpack.c.bf16 %v904_v41, %v903_v7 }
 0x1f0   : > { %v932_v38 = vpack.c.bf16 %v902_v43, %v901_v60  ;;  %v3810_v19 = vpop.f32.mrb[16].mxu1 }
 0x1f1   : > { %v835_v31 = vadd.f32 %v3810_v19, %v4619_v46  ;;  %v826_v24 = vpop.f32.mrb[17].mxu1 }
 0x1f2   : > { %v827_v55 = vadd.f32 %v4619_v46, %v826_v24  ;;  %v3811_v30 = vpop.f32.mrb[18].mxu1  ;;  %3840 = vmatprep.mubr.msk.bf16.mxu0 %vm679_vm1, %v932_v38 }
 0x1f3   : > { %v838_v35 = vadd.f32 %v3811_v30, %v4619_v46  ;;  %v829_v4 = vpop.f32.mrb[19].mxu1  ;;  %3841 = vmatmul.mubr.msk.bf16.gmra.mrb[44].mxu0 %vm679_vm1, %v933_v33  ;;  %v907_v42 = vmax.f32 %v835_v31, 0.0 }
 0x1f4   : > { %v830_v2 = vadd.f32 %v4619_v46, %v829_v4  ;;  %v905_v16 = vmax.f32 %v827_v55, 0.0 }
 0x1f5   : > { %v908_v57 = vmax.f32 %v838_v35, 0.0 }
 0x1f6   : > { %v906_v53 = vmax.f32 %v830_v2, 0.0 }
 0x1f7   : > { %v935_v7 = vpack.c.bf16 %v908_v57, %v907_v42 }
 0x1f8   : > { %v934_v41 = vpack.c.bf16 %v906_v53, %v905_v16  ;;  %v3814_v60 = vpop.f32.mrb[20].mxu1 }
 0x1f9   : > { %v851_v43 = vadd.f32 %v3814_v60, %v4619_v46  ;;  %v842_v19 = vpop.f32.mrb[21].mxu1 }
 0x1fa   : > { %v843_v24 = vadd.f32 %v4619_v46, %v842_v19  ;;  %v3815_v38 = vpop.f32.mrb[22].mxu1  ;;  %3844 = vmatprep.mubr.msk.bf16.mxu0 %vm679_vm1, %v934_v41 }
 0x1fb   : > { %v854_v30 = vadd.f32 %v3815_v38, %v4619_v46  ;;  %v845_v33 = vpop.f32.mrb[23].mxu1  ;;  %3845 = vmatmul.mubr.msk.bf16.gmra.mrb[48].mxu0 %vm679_vm1, %v935_v7  ;;  %v911_v55 = vmax.f32 %v851_v43, 0.0 }
 0x1fc   : > { %v846_v31 = vadd.f32 %v4619_v46, %v845_v33  ;;  %v909_v4 = vmax.f32 %v843_v24, 0.0 }
 0x1fd   : > { %v912_v35 = vmax.f32 %v854_v30, 0.0 }
 0x1fe   : > { %v910_v2 = vmax.f32 %v846_v31, 0.0 }
 0x1ff   : > { %v937_v42 = vpack.c.bf16 %v912_v35, %v911_v55 }
 0x200   : > { %v936_v57 = vpack.c.bf16 %v910_v2, %v909_v4  ;;  %v3818_v16 = vpop.f32.mrb[24].mxu1 }
 0x201   : > { %v867_v53 = vadd.f32 %v3818_v16, %v4619_v46  ;;  %v858_v60 = vpop.f32.mrb[25].mxu1 }
 0x202   : > { %v859_v19 = vadd.f32 %v4619_v46, %v858_v60  ;;  %v3819_v41 = vpop.f32.mrb[26].mxu1  ;;  %3848 = vmatprep.mubr.msk.bf16.mxu0 %vm679_vm1, %v936_v57 }
 0x203   : > { %v870_v38 = vadd.f32 %v3819_v41, %v4619_v46  ;;  %v861_v7 = vpop.f32.mrb[27].mxu1  ;;  %3849 = vmatmul.mubr.msk.bf16.gmra.mrb[52].mxu0 %vm679_vm1, %v937_v42  ;;  %v915_v24 = vmax.f32 %v867_v53, 0.0 }
 0x204   : > { %v862_v43 = vadd.f32 %v4619_v46, %v861_v7  ;;  %v913_v33 = vmax.f32 %v859_v19, 0.0 }
 0x205   : > { %v916_v30 = vmax.f32 %v870_v38, 0.0 }
 0x206   : > { %v914_v31 = vmax.f32 %v862_v43, 0.0 }
 0x207   : > { %v939_v55 = vpack.c.bf16 %v916_v30, %v915_v24 }
 0x208   : > { %v938_v35 = vpack.c.bf16 %v914_v31, %v913_v33  ;;  %v3822_v4 = vpop.f32.mrb[28].mxu1  ;;  %v4138_v33 = vld [vmem:[%s5439_s3 + $0x30] sm:$0xff]   ;;  %v4139_v31 = vld [vmem:[%s5439_s3 + $0x38] sm:$0xff]  }
 0x209   : > { %v883_v2 = vadd.f32 %v3822_v4, %v4619_v46  ;;  %v874_v16 = vpop.f32.mrb[29].mxu1  ;;  %3896 = vmatprep.subr.bf16.mxu0 %v4138_v33 }
 0x20a   : > { %v875_v60 = vadd.f32 %v4619_v46, %v874_v16  ;;  %v3823_v57 = vpop.f32.mrb[30].mxu1  ;;  %3852 = vmatprep.mubr.msk.bf16.mxu0 %vm679_vm1, %v938_v35  ;;  %3897 = vmatpush3.bf16.msra.mxu0 %v4138_v33 }
 0x20b   : > { %v886_v41 = vadd.f32 %v3823_v57, %v4619_v46  ;;  %v877_v42 = vpop.f32.mrb[31].mxu1  ;;  %3853 = vmatmul.mubr.msk.bf16.gmra.mrb[56].mxu0 %vm679_vm1, %v939_v55  ;;  %v919_v19 = vmax.f32 %v883_v2, 0.0  ;;  %3898 = vmatprep.subr.bf16.mxu0 %v4139_v31 }
 0x20c   : > { %v878_v53 = vadd.f32 %v4619_v46, %v877_v42  ;;  %v917_v7 = vmax.f32 %v875_v60, 0.0  ;;  %v4678_v46 = vld [vmem:[%s5440_s4 + $0x1] ss:$0 sm:$0xff] }
 0x20d   : > { %v920_v38 = vmax.f32 %v886_v41, 0.0 }
 0x20e   : > { %v918_v43 = vmax.f32 %v878_v53, 0.0  ;;  %3899 = vmatpush3.bf16.msra.mxu0 %v4139_v31 }
 0x20f   : > { %v941_v24 = vpack.c.bf16 %v920_v38, %v919_v19 }
 0x210   : > { %v940_v30 = vpack.c.bf16 %v918_v43, %v917_v7 }
 0x212   : > { %3856 = vmatprep.mubr.msk.bf16.mxu0 %vm679_vm1, %v940_v30 }
 0x213   : > { %3857 = vmatmul.mubr.msk.bf16.gmra.mrb[60].mxu0 %vm679_vm1, %v941_v24 }
 0x2ae   : > { %v3830_v55 = vpop.f32.mrb[32].mxu0 }
 0x2af   : > { %v1053_v35 = vadd.f32 %v3830_v55, %v4678_v46  ;;  %v1044_v4 = vpop.f32.mrb[33].mxu0 }
 0x2b0   : > { %v1045_v2 = vadd.f32 %v4678_v46, %v1044_v4  ;;  %v3831_v16 = vpop.f32.mrb[34].mxu0 }
 0x2b1   : > { %v1056_v60 = vadd.f32 %v3831_v16, %v4678_v46  ;;  %v1047_v57 = vpop.f32.mrb[35].mxu0  ;;  %v1173_v53 = vmax.f32 %v1053_v35, 0.0 }
 0x2b2   : > { %v1171_v41 = vmax.f32 %v1045_v2, 0.0  ;;  %v1048_v42 = vadd.f32 %v4678_v46, %v1047_v57 }
 0x2b3   : > { %v1174_v19 = vmax.f32 %v1056_v60, 0.0  ;;  %v4698_v33 = vadd.f32 %v1173_v53, %v610_v1 }
 0x2b4   : > { %v1172_v38 = vmax.f32 %v1048_v42, 0.0  ;;  %v4690_v43 = vadd.f32 %v1171_v41, %v608_v63 }
 0x2b5   : > { %v4686_v7 = vadd.f32 %v1174_v19, %v611_v62 }
 0x2b6   : > { %v4694_v24 = vadd.f32 %v1172_v38, %v609_v0  ;;  %v3834_v30 = vpop.f32.mrb[36].mxu0 }
 0x2b7   : > { %v1069_v31 = vadd.f32 %v3834_v30, %v4678_v46  ;;  %v1060_v55 = vpop.f32.mrb[37].mxu0  ;;  %v1241_v63 = vpack.c.bf16 %v4686_v7, %v4698_v33 }
 0x2b8   : > { %v1240_v59 = vpack.c.bf16 %v4694_v24, %v4690_v43  ;;  %v1061_v62 = vadd.f32 %v4678_v46, %v1060_v55  ;;  %v3835_v56 = vpop.f32.mrb[38].mxu0 }
 0x2b9   : > { %v1072_v61 = vadd.f32 %v3835_v56, %v4678_v46  ;;  %v1063_v0 = vpop.f32.mrb[39].mxu0  ;;  %v1177_v1 = vmax.f32 %v1069_v31, 0.0 }
 0x2ba   : > { %v1175_v35 = vmax.f32 %v1061_v62, 0.0  ;;  %v1064_v58 = vadd.f32 %v4678_v46, %v1063_v0  ;;  %3864 = vmatprep.mubr.msk.bf16.mxu1 %vm679_vm1, %v1240_v59 }
 0x2bb   : > { %v1178_v4 = vmax.f32 %v1072_v61, 0.0  ;;  %3865 = vmatmul.mubr.msk.bf16.vlgmr.msra.gmra.mrb[32].mxu1 %vm679_vm1, %v1241_v63  ;;  %v4724_v42 = vadd.f32 %v1177_v1, %v614_v15 }
 0x2bc   : > { %v1176_v2 = vmax.f32 %v1064_v58, 0.0  ;;  %v4716_v60 = vadd.f32 %v1175_v35, %v612_v13 }
 0x2bd   : > { %v4712_v16 = vadd.f32 %v1178_v4, %v615_v12 }
 0x2be   : > { %v4720_v57 = vadd.f32 %v1176_v2, %v613_v14  ;;  %v3838_v41 = vpop.f32.mrb[40].mxu0  ;;  %v5469_v2 = vmax.f32 %v4479_v34, 0.0 }
 0x2bf   : > { %v1085_v53 = vadd.f32 %v3838_v41, %v4678_v46  ;;  %v1076_v19 = vpop.f32.mrb[41].mxu0  ;;  %v1243_v13 = vpack.c.bf16 %v4712_v16, %v4724_v42 }
 0x2c0   : > { %v1242_v9 = vpack.c.bf16 %v4720_v57, %v4716_v60  ;;  %v1077_v12 = vadd.f32 %v4678_v46, %v1076_v19  ;;  %v3839_v6 = vpop.f32.mrb[42].mxu0 }
 0x2c1   : > { %v1088_v11 = vadd.f32 %v3839_v6, %v4678_v46  ;;  %v1079_v14 = vpop.f32.mrb[43].mxu0  ;;  %v1181_v15 = vmax.f32 %v1085_v53, 0.0  ;;  %v5470_v53 = vmax.f32 %v4490_v39, 0.0 }
 0x2c2   : > { %v1179_v38 = vmax.f32 %v1077_v12, 0.0  ;;  %v1080_v8 = vadd.f32 %v4678_v46, %v1079_v14  ;;  %3868 = vmatprep.mubr.msk.bf16.mxu1 %vm679_vm1, %v1242_v9  ;;  %v5472_v12 = vmax.f32 %v4483_v36, 0.0 }
 0x2c3   : > { %v1182_v30 = vmax.f32 %v1088_v11, 0.0  ;;  %3869 = vmatmul.mubr.msk.bf16.gmra.mrb[36].mxu1 %vm679_vm1, %v1243_v13  ;;  %v4750_v63 = vadd.f32 %v1181_v15, %v618_v29 }
 0x2c4   : > { %v1180_v31 = vmax.f32 %v1080_v8, 0.0  ;;  %v4742_v59 = vadd.f32 %v1179_v38, %v616_v27 }
 0x2c5   : > { %v4738_v55 = vadd.f32 %v1182_v30, %v619_v26 }
 0x2c6   : > { %v4746_v62 = vadd.f32 %v1180_v31, %v617_v28  ;;  %v3842_v56 = vpop.f32.mrb[44].mxu0 }
 0x2c7   : > { %v1101_v61 = vadd.f32 %v3842_v56, %v4678_v46  ;;  %v1092_v0 = vpop.f32.mrb[45].mxu0  ;;  %v1245_v27 = vpack.c.bf16 %v4738_v55, %v4750_v63  ;;  %v5473_v56 = vmax.f32 %v4512_v51, 0.0 }
 0x2c8   : > { %v1244_v23 = vpack.c.bf16 %v4746_v62, %v4742_v59  ;;  %v1093_v26 = vadd.f32 %v4678_v46, %v1092_v0  ;;  %v3843_v20 = vpop.f32.mrb[46].mxu0  ;;  %v5474_v0 = vmax.f32 %v4505_v48, 0.0 }
 0x2c9   : > { %v1104_v25 = vadd.f32 %v3843_v20, %v4678_v46  ;;  %v1095_v28 = vpop.f32.mrb[47].mxu0  ;;  %v1185_v29 = vmax.f32 %v1101_v61, 0.0 }
 0x2ca   : > { %v1183_v35 = vmax.f32 %v1093_v26, 0.0  ;;  %v1096_v22 = vadd.f32 %v4678_v46, %v1095_v28  ;;  %3872 = vmatprep.mubr.msk.bf16.mxu1 %vm679_vm1, %v1244_v23  ;;  %v5475_v26 = vmax.f32 %v4516_v54, 0.0 }
 0x2cb   : > { %v1186_v58 = vmax.f32 %v1104_v25, 0.0  ;;  %3873 = vmatmul.mubr.msk.bf16.gmra.mrb[40].mxu1 %vm679_vm1, %v1245_v27  ;;  %v4776_v6 = vadd.f32 %v1185_v29, %v5472_v12  ;;  %v5476_v25 = vmax.f32 %v4509_v50, 0.0 }
 0x2cc   : > { %v1184_v1 = vmax.f32 %v1096_v22, 0.0  ;;  %v4768_v41 = vadd.f32 %v1183_v35, %v5469_v2 }
 0x2cd   : > { %v4764_v4 = vadd.f32 %v1186_v58, %v623_v40 }
 0x2ce   : > { %v4772_v19 = vadd.f32 %v1184_v1, %v5470_v53  ;;  %v3846_v9 = vpop.f32.mrb[48].mxu0 }
 0x2cf   : > { %v1117_v13 = vadd.f32 %v3846_v9, %v4678_v46  ;;  %v1108_v11 = vpop.f32.mrb[49].mxu0  ;;  %v1247_v14 = vpack.c.bf16 %v4764_v4, %v4776_v6 }
 0x2d0   : > { %5471 = vst [vmem:[#allocation5_spill] sm:$0xff] %v4772_v19  ;;  %v1246_v37 = vpack.c.bf16 %v4772_v19, %v4768_v41  ;;  %v1109_v40 = vadd.f32 %v4678_v46, %v1108_v11  ;;  %v3847_v34 = vpop.f32.mrb[50].mxu0 }
 0x2d1   : > { %v1120_v39 = vadd.f32 %v3847_v34, %v4678_v46  ;;  %v1111_v38 = vpop.f32.mrb[51].mxu0  ;;  %v1189_v15 = vmax.f32 %v1117_v13, 0.0  ;;  %v5477_v13 = vmax.f32 %v4538_v18, 0.0  ;;  %v5479_v34 = vmax.f32 %v4542_v21, 0.0 }
 0x2d2   : > { %v1187_v8 = vmax.f32 %v1109_v40, 0.0  ;;  %v1112_v36 = vadd.f32 %v4678_v46, %v1111_v38  ;;  %3876 = vmatprep.mubr.msk.bf16.mxu1 %vm679_vm1, %v1246_v37  ;;  %v5478_v37 = vmax.f32 %v4531_v10, 0.0  ;;  %v5480_v38 = vmax.f32 %v4535_v17, 0.0 }
 0x2d3   : > { %v1190_v30 = vmax.f32 %v1120_v39, 0.0  ;;  %3877 = vmatmul.mubr.msk.bf16.gmra.mrb[44].mxu1 %vm679_vm1, %v1247_v14  ;;  %v4802_v28 = vadd.f32 %v1189_v15, %v5476_v25 }
 0x2d4   : > { %v1188_v31 = vmax.f32 %v1112_v36, 0.0  ;;  %v4794_v23 = vadd.f32 %v1187_v8, %v5474_v0 }
 0x2d5   : > { %v4790_v61 = vadd.f32 %v1190_v30, %v5473_v56 }
 0x2d6   : > { %v4798_v20 = vadd.f32 %v1188_v31, %v5475_v26  ;;  %v3850_v27 = vpop.f32.mrb[52].mxu0 }
 0x2d7   : > { %v1133_v35 = vadd.f32 %v3850_v27, %v4678_v46  ;;  %v1124_v22 = vpop.f32.mrb[53].mxu0  ;;  %v1249_v58 = vpack.c.bf16 %v4790_v61, %v4802_v28 }
 0x2d8   : > { %v1248_v51 = vpack.c.bf16 %v4798_v20, %v4794_v23  ;;  %v1125_v29 = vadd.f32 %v4678_v46, %v1124_v22  ;;  %v3851_v48 = vpop.f32.mrb[54].mxu0 }
 0x2d9   : > { %v1136_v54 = vadd.f32 %v3851_v48, %v4678_v46  ;;  %v1127_v1 = vpop.f32.mrb[55].mxu0  ;;  %v1193_v53 = vmax.f32 %v1133_v35, 0.0  ;;  %v5481_v35 = vmax.f32 %v4564_v49, 0.0  ;;  %v5483_v48 = vmax.f32 %v4568_v3, 0.0 }
 0x2da   : > { %v1191_v2 = vmax.f32 %v1125_v29, 0.0  ;;  %v1128_v50 = vadd.f32 %v4678_v46, %v1127_v1  ;;  %3880 = vmatprep.mubr.msk.bf16.mxu1 %vm679_vm1, %v1248_v51  ;;  %v5482_v51 = vmax.f32 %v4557_v45, 0.0  ;;  %v5484_v1 = vmax.f32 %v4561_v47, 0.0 }
 0x2db   : > { %v1194_v9 = vmax.f32 %v1136_v54, 0.0  ;;  %3881 = vmatmul.mubr.msk.bf16.gmra.mrb[48].mxu1 %vm679_vm1, %v1249_v58  ;;  %v4828_v8 = vadd.f32 %v1193_v53, %v5480_v38 }
 0x2dc   : > { %v1192_v12 = vmax.f32 %v1128_v50, 0.0  ;;  %v4820_v40 = vadd.f32 %v1191_v2, %v5478_v37 }
 0x2dd   : > { %v4816_v11 = vadd.f32 %v1194_v9, %v5477_v13 }
 0x2de   : > { %v4824_v14 = vadd.f32 %v1192_v12, %v5479_v34  ;;  %v3854_v39 = vpop.f32.mrb[56].mxu0 }
 0x2df   : > { %v1149_v36 = vadd.f32 %v3854_v39, %v4678_v46  ;;  %v1140_v15 = vpop.f32.mrb[57].mxu0  ;;  %v1251_v31 = vpack.c.bf16 %v4816_v11, %v4828_v8 }
 0x2e0   : > { %v1250_v18 = vpack.c.bf16 %v4824_v14, %v4820_v40  ;;  %v1141_v30 = vadd.f32 %v4678_v46, %v1140_v15  ;;  %v3855_v10 = vpop.f32.mrb[58].mxu0 }
 0x2e1   : > { %v1152_v21 = vadd.f32 %v3855_v10, %v4678_v46  ;;  %v1143_v56 = vpop.f32.mrb[59].mxu0  ;;  %v1197_v26 = vmax.f32 %v1149_v36, 0.0  ;;  %v5485_v36 = vmax.f32 %v4590_v32, 0.0  ;;  %v5487_v10 = vmax.f32 %v4594_v5, 0.0  ;;  %v4140_v5 = vld [vmem:[%s5439_s3 + $0x40] sm:$0xff]  }
 0x2e2   : > { %v1195_v0 = vmax.f32 %v1141_v30, 0.0  ;;  %v1144_v17 = vadd.f32 %v4678_v46, %v1143_v56  ;;  %3884 = vmatprep.mubr.msk.bf16.mxu1 %vm679_vm1, %v1250_v18  ;;  %v5486_v18 = vmax.f32 %v4583_v44, 0.0  ;;  %3932 = vmatprep.subr.bf16.mxu1 %v4140_v5  ;;  %v4894_v44 = vld [vmem:[%s5440_s4 + $0x2] ss:$0 sm:$0xff] }
 0x2e3   : > { %v1198_v27 = vmax.f32 %v1152_v21, 0.0  ;;  %3885 = vmatmul.mubr.msk.bf16.gmra.mrb[52].mxu1 %vm679_vm1, %v1251_v31  ;;  %v4854_v2 = vadd.f32 %v1197_v26, %v5484_v1 }
 0x2e4   : > { %v1196_v25 = vmax.f32 %v1144_v17, 0.0  ;;  %v4846_v29 = vadd.f32 %v1195_v0, %v5482_v51  ;;  %3933 = vmatpush3.bf16.msra.mxu1 %v4140_v5 }
 0x2e5   : > { %v4842_v22 = vadd.f32 %v1198_v27, %v5481_v35 }
 0x2e6   : > { %v4850_v58 = vadd.f32 %v1196_v25, %v5483_v48  ;;  %v3858_v54 = vpop.f32.mrb[60].mxu0 }
 0x2e7   : > { %v1165_v50 = vadd.f32 %v3858_v54, %v4678_v46  ;;  %v1156_v53 = vpop.f32.mrb[61].mxu0  ;;  %v1253_v12 = vpack.c.bf16 %v4842_v22, %v4854_v2 }
 0x2e8   : > { %v1252_v49 = vpack.c.bf16 %v4850_v58, %v4846_v29  ;;  %v1157_v9 = vadd.f32 %v4678_v46, %v1156_v53  ;;  %v3859_v45 = vpop.f32.mrb[62].mxu0 }
 0x2e9   : > { %v1168_v3 = vadd.f32 %v3859_v45, %v4678_v46  ;;  %v1159_v13 = vpop.f32.mrb[63].mxu0  ;;  %v1201_v34 = vmax.f32 %v1165_v50, 0.0 }
 0x2ea   : > { %v1199_v37 = vmax.f32 %v1157_v9, 0.0  ;;  %v1160_v47 = vadd.f32 %v4678_v46, %v1159_v13  ;;  %3888 = vmatprep.mubr.msk.bf16.mxu1 %vm679_vm1, %v1252_v49  ;;  %v5489_v46 = vmax.f32 %v4587_v52, 0.0 }
 0x2eb   : > { %v1202_v39 = vmax.f32 %v1168_v3, 0.0  ;;  %3889 = vmatmul.mubr.msk.bf16.gmra.mrb[56].mxu1 %vm679_vm1, %v1253_v12 }
 0x2ec   : > { %v1200_v38 = vmax.f32 %v1160_v47, 0.0  ;;  %v4872_v30 = vadd.f32 %v1199_v37, %v5486_v18  ;;  %v4880_v21 = vadd.f32 %v1201_v34, %v5489_v46 }
 0x2ed   : > { %v4868_v15 = vadd.f32 %v1202_v39, %v5485_v36 }
 0x2ee   : > { %v4876_v31 = vadd.f32 %v1200_v38, %v5487_v10 }
 0x2ef   : > { %v1255_v32 = vpack.c.bf16 %v4868_v15, %v4880_v21 }
 0x2f0   : > { %5488 = vst [vmem:[#allocation6_spill] sm:$0xff] %v4876_v31  ;;  %v1254_v56 = vpack.c.bf16 %v4876_v31, %v4872_v30 }
 0x2f2   : > { %3892 = vmatprep.mubr.msk.bf16.mxu1 %vm679_vm1, %v1254_v56 }
 0x2f3   : > { %3893 = vmatmul.mubr.msk.bf16.gmra.mrb[60].mxu1 %vm679_vm1, %v1255_v32 }
 0x38e   : > { %v3866_v52 = vpop.f32.mrb[32].mxu1 }
 0x38f   : > { %v1367_v0 = vadd.f32 %v3866_v52, %v4894_v44  ;;  %v1358_v17 = vpop.f32.mrb[33].mxu1 }
 0x390   : > { %v1359_v26 = vadd.f32 %v4894_v44, %v1358_v17  ;;  %v3867_v27 = vpop.f32.mrb[34].mxu1 }
 0x391   : > { %v1370_v25 = vadd.f32 %v3867_v27, %v4894_v44  ;;  %v1361_v35 = vpop.f32.mrb[35].mxu1  ;;  %v1487_v48 = vmax.f32 %v1367_v0, 0.0 }
 0x392   : > { %v1362_v51 = vadd.f32 %v4894_v44, %v1361_v35  ;;  %v1485_v1 = vmax.f32 %v1359_v26, 0.0 }
 0x393   : > { %v1488_v54 = vmax.f32 %v1370_v25, 0.0 }
 0x394   : > { %v1486_v50 = vmax.f32 %v1362_v51, 0.0 }
 0x395   : > { %v1523_v53 = vpack.c.bf16 %v1488_v54, %v1487_v48 }
 0x396   : > { %v1522_v49 = vpack.c.bf16 %v1486_v50, %v1485_v1  ;;  %v3870_v9 = vpop.f32.mrb[36].mxu1 }
 0x397   : > { %v1383_v45 = vadd.f32 %v3870_v9, %v4894_v44  ;;  %v1374_v12 = vpop.f32.mrb[37].mxu1 }
 0x398   : > { %v1375_v3 = vadd.f32 %v4894_v44, %v1374_v12  ;;  %v3871_v13 = vpop.f32.mrb[38].mxu1  ;;  %3900 = vmatprep.mubr.msk.bf16.mxu0 %vm679_vm1, %v1522_v49 }
 0x399   : > { %v1386_v37 = vadd.f32 %v3871_v13, %v4894_v44  ;;  %v1377_v47 = vpop.f32.mrb[39].mxu1  ;;  %3901 = vmatmul.mubr.msk.bf16.vlgmr.msra.gmra.mrb[64].mxu0 %vm679_vm1, %v1523_v53  ;;  %v1491_v39 = vmax.f32 %v1383_v45, 0.0 }
 0x39a   : > { %v1378_v34 = vadd.f32 %v4894_v44, %v1377_v47  ;;  %v1489_v36 = vmax.f32 %v1375_v3, 0.0 }
 0x39b   : > { %v1492_v38 = vmax.f32 %v1386_v37, 0.0 }
 0x39c   : > { %v1490_v18 = vmax.f32 %v1378_v34, 0.0 }
 0x39d   : > { %v1525_v10 = vpack.c.bf16 %v1492_v38, %v1491_v39 }
 0x39e   : > { %v1524_v46 = vpack.c.bf16 %v1490_v18, %v1489_v36  ;;  %v3874_v56 = vpop.f32.mrb[40].mxu1 }
 0x39f   : > { %v1399_v32 = vadd.f32 %v3874_v56, %v4894_v44  ;;  %v1390_v5 = vpop.f32.mrb[41].mxu1 }
 0x3a0   : > { %v1391_v52 = vadd.f32 %v4894_v44, %v1390_v5  ;;  %v3875_v0 = vpop.f32.mrb[42].mxu1  ;;  %3904 = vmatprep.mubr.msk.bf16.mxu0 %vm679_vm1, %v1524_v46 }
 0x3a1   : > { %v1402_v17 = vadd.f32 %v3875_v0, %v4894_v44  ;;  %v1393_v26 = vpop.f32.mrb[43].mxu1  ;;  %3905 = vmatmul.mubr.msk.bf16.gmra.mrb[68].mxu0 %vm679_vm1, %v1525_v10  ;;  %v1495_v25 = vmax.f32 %v1399_v32, 0.0 }
 0x3a2   : > { %v1394_v27 = vadd.f32 %v4894_v44, %v1393_v26  ;;  %v1493_v51 = vmax.f32 %v1391_v52, 0.0 }
 0x3a3   : > { %v1496_v35 = vmax.f32 %v1402_v17, 0.0 }
 0x3a4   : > { %v1494_v48 = vmax.f32 %v1394_v27, 0.0 }
 0x3a5   : > { %v1527_v54 = vpack.c.bf16 %v1496_v35, %v1495_v25 }
 0x3a6   : > { %v1526_v1 = vpack.c.bf16 %v1494_v48, %v1493_v51  ;;  %v3878_v50 = vpop.f32.mrb[44].mxu1 }
 0x3a7   : > { %v1415_v53 = vadd.f32 %v3878_v50, %v4894_v44  ;;  %v1406_v49 = vpop.f32.mrb[45].mxu1 }
 0x3a8   : > { %v1407_v9 = vadd.f32 %v4894_v44, %v1406_v49  ;;  %v3879_v45 = vpop.f32.mrb[46].mxu1  ;;  %3908 = vmatprep.mubr.msk.bf16.mxu0 %vm679_vm1, %v1526_v1 }
 0x3a9   : > { %v1418_v12 = vadd.f32 %v3879_v45, %v4894_v44  ;;  %v1409_v3 = vpop.f32.mrb[47].mxu1  ;;  %3909 = vmatmul.mubr.msk.bf16.gmra.mrb[72].mxu0 %vm679_vm1, %v1527_v54  ;;  %v1499_v37 = vmax.f32 %v1415_v53, 0.0 }
 0x3aa   : > { %v1410_v13 = vadd.f32 %v4894_v44, %v1409_v3  ;;  %v1497_v34 = vmax.f32 %v1407_v9, 0.0 }
 0x3ab   : > { %v1500_v47 = vmax.f32 %v1418_v12, 0.0 }
 0x3ac   : > { %v1498_v39 = vmax.f32 %v1410_v13, 0.0 }
 0x3ad   : > { %v1529_v38 = vpack.c.bf16 %v1500_v47, %v1499_v37 }
 0x3ae   : > { %v1528_v36 = vpack.c.bf16 %v1498_v39, %v1497_v34  ;;  %v3882_v18 = vpop.f32.mrb[48].mxu1 }
 0x3af   : > { %v1431_v10 = vadd.f32 %v3882_v18, %v4894_v44  ;;  %v1422_v46 = vpop.f32.mrb[49].mxu1 }
 0x3b0   : > { %v1423_v56 = vadd.f32 %v4894_v44, %v1422_v46  ;;  %v3883_v32 = vpop.f32.mrb[50].mxu1  ;;  %3912 = vmatprep.mubr.msk.bf16.mxu0 %vm679_vm1, %v1528_v36 }
 0x3b1   : > { %v1434_v5 = vadd.f32 %v3883_v32, %v4894_v44  ;;  %v1425_v52 = vpop.f32.mrb[51].mxu1  ;;  %3913 = vmatmul.mubr.msk.bf16.gmra.mrb[76].mxu0 %vm679_vm1, %v1529_v38  ;;  %v1503_v17 = vmax.f32 %v1431_v10, 0.0 }
 0x3b2   : > { %v1426_v0 = vadd.f32 %v4894_v44, %v1425_v52  ;;  %v1501_v27 = vmax.f32 %v1423_v56, 0.0 }
 0x3b3   : > { %v1504_v26 = vmax.f32 %v1434_v5, 0.0 }
 0x3b4   : > { %v1502_v25 = vmax.f32 %v1426_v0, 0.0 }
 0x3b5   : > { %v1531_v35 = vpack.c.bf16 %v1504_v26, %v1503_v17 }
 0x3b6   : > { %v1530_v51 = vpack.c.bf16 %v1502_v25, %v1501_v27  ;;  %v3886_v48 = vpop.f32.mrb[52].mxu1 }
 0x3b7   : > { %v1447_v54 = vadd.f32 %v3886_v48, %v4894_v44  ;;  %v1438_v1 = vpop.f32.mrb[53].mxu1 }
 0x3b8   : > { %v1439_v50 = vadd.f32 %v4894_v44, %v1438_v1  ;;  %v3887_v53 = vpop.f32.mrb[54].mxu1  ;;  %3916 = vmatprep.mubr.msk.bf16.mxu0 %vm679_vm1, %v1530_v51 }
 0x3b9   : > { %v1450_v49 = vadd.f32 %v3887_v53, %v4894_v44  ;;  %v1441_v9 = vpop.f32.mrb[55].mxu1  ;;  %3917 = vmatmul.mubr.msk.bf16.gmra.mrb[80].mxu0 %vm679_vm1, %v1531_v35  ;;  %v1507_v12 = vmax.f32 %v1447_v54, 0.0 }
 0x3ba   : > { %v1442_v45 = vadd.f32 %v4894_v44, %v1441_v9  ;;  %v1505_v13 = vmax.f32 %v1439_v50, 0.0 }
 0x3bb   : > { %v1508_v3 = vmax.f32 %v1450_v49, 0.0 }
 0x3bc   : > { %v1506_v37 = vmax.f32 %v1442_v45, 0.0 }
 0x3bd   : > { %v1533_v47 = vpack.c.bf16 %v1508_v3, %v1507_v12 }
 0x3be   : > { %v1532_v34 = vpack.c.bf16 %v1506_v37, %v1505_v13  ;;  %v3890_v39 = vpop.f32.mrb[56].mxu1  ;;  %v4141_v37 = vld [vmem:[%s5439_s3 + $0x48] sm:$0xff]  }
 0x3bf   : > { %v1463_v38 = vadd.f32 %v3890_v39, %v4894_v44  ;;  %v1454_v36 = vpop.f32.mrb[57].mxu1  ;;  %3934 = vmatprep.subr.bf16.mxu1 %v4141_v37 }
 0x3c0   : > { %v1455_v18 = vadd.f32 %v4894_v44, %v1454_v36  ;;  %v3891_v10 = vpop.f32.mrb[58].mxu1  ;;  %3920 = vmatprep.mubr.msk.bf16.mxu0 %vm679_vm1, %v1532_v34  ;;  %3935 = vmatpush3.bf16.msra.mxu1 %v4141_v37 }
 0x3c1   : > { %v1466_v46 = vadd.f32 %v3891_v10, %v4894_v44  ;;  %v1457_v56 = vpop.f32.mrb[59].mxu1  ;;  %3921 = vmatmul.mubr.msk.bf16.gmra.mrb[84].mxu0 %vm679_vm1, %v1533_v47  ;;  %v1511_v5 = vmax.f32 %v1463_v38, 0.0 }
 0x3c2   : > { %v1458_v32 = vadd.f32 %v4894_v44, %v1457_v56  ;;  %v1509_v0 = vmax.f32 %v1455_v18, 0.0 }
 0x3c3   : > { %v1512_v52 = vmax.f32 %v1466_v46, 0.0 }
 0x3c4   : > { %v1510_v17 = vmax.f32 %v1458_v32, 0.0 }
 0x3c5   : > { %v1535_v26 = vpack.c.bf16 %v1512_v52, %v1511_v5 }
 0x3c6   : > { %v1534_v27 = vpack.c.bf16 %v1510_v17, %v1509_v0  ;;  %v3894_v25 = vpop.f32.mrb[60].mxu1  ;;  %v4958_v0 = vld [vmem:[%s5440_s4 + $0x3] ss:$0 sm:$0xff] }
 0x3c7   : > { %v1479_v35 = vadd.f32 %v3894_v25, %v4894_v44  ;;  %v1470_v51 = vpop.f32.mrb[61].mxu1 }
 0x3c8   : > { %v1471_v48 = vadd.f32 %v4894_v44, %v1470_v51  ;;  %v3895_v54 = vpop.f32.mrb[62].mxu1  ;;  %3924 = vmatprep.mubr.msk.bf16.mxu0 %vm679_vm1, %v1534_v27 }
 0x3c9   : > { %v1482_v1 = vadd.f32 %v3895_v54, %v4894_v44  ;;  %v1473_v50 = vpop.f32.mrb[63].mxu1  ;;  %3925 = vmatmul.mubr.msk.bf16.gmra.mrb[88].mxu0 %vm679_vm1, %v1535_v26  ;;  %v1515_v49 = vmax.f32 %v1479_v35, 0.0 }
 0x3ca   : > { %v1474_v53 = vadd.f32 %v4894_v44, %v1473_v50  ;;  %v1513_v45 = vmax.f32 %v1471_v48, 0.0  ;;  %v4950_v44 = vld [vmem:[%s5439_s3 + $0x50] sm:$0xff]  }
 0x3cb   : > { %v1516_v9 = vmax.f32 %v1482_v1, 0.0  ;;  %3952 = vmatprep.subr.bf16.mxu1 %v4950_v44 }
 0x3cc   : > { %v1514_v12 = vmax.f32 %v1474_v53, 0.0 }
 0x3cd   : > { %v1537_v3 = vpack.c.bf16 %v1516_v9, %v1515_v49 }
 0x3ce   : > { %v1536_v13 = vpack.c.bf16 %v1514_v12, %v1513_v45 }
 0x3d0   : > { %3928 = vmatprep.mubr.msk.bf16.mxu0 %vm679_vm1, %v1536_v13 }
 0x3d1   : > { %3929 = vmatmul.mubr.msk.bf16.gmra.mrb[92].mxu0 %vm679_vm1, %v1537_v3 }
 0x46c   : > { %v3902_v47 = vpop.f32.mrb[64].mxu0 }
 0x46d   : > { %v1640_v34 = vpop.f32.mrb[65].mxu0  ;;  %v1649_v27 = vadd.f32 %v3902_v47, %v4958_v0 }
 0x46e   : > { %v3903_v39 = vpop.f32.mrb[66].mxu0  ;;  %v1641_v35 = vadd.f32 %v4958_v0, %v1640_v34 }
 0x46f   : > { %v1643_v38 = vpop.f32.mrb[67].mxu0  ;;  %v1769_v48 = vmax.f32 %v1649_v27, 0.0  ;;  %v1652_v54 = vadd.f32 %v3903_v39, %v4958_v0 }
 0x470   : > { %v1767_v1 = vmax.f32 %v1641_v35, 0.0  ;;  %v1644_v50 = vadd.f32 %v4958_v0, %v1643_v38 }
 0x471   : > { %v1801_v3 = vadd.f32 %v1769_v48, %v4698_v33  ;;  %v1770_v13 = vmax.f32 %v1652_v54, 0.0 }
 0x472   : > { %v1799_v34 = vadd.f32 %v1767_v1, %v4690_v43  ;;  %v1768_v39 = vmax.f32 %v1644_v50, 0.0 }
 0x474   : > { %v3906_v36 = vpop.f32.mrb[68].mxu0 }
 0x475   : > { %v1656_v18 = vpop.f32.mrb[69].mxu0  ;;  %v1665_v53 = vadd.f32 %v3906_v36, %v4958_v0 }
 0x476   : > { %v3907_v10 = vpop.f32.mrb[70].mxu0  ;;  %v1657_v9 = vadd.f32 %v4958_v0, %v1656_v18 }
 0x477   : > { %v1659_v46 = vpop.f32.mrb[71].mxu0  ;;  %v1773_v36 = vmax.f32 %v1665_v53, 0.0  ;;  %v1668_v31 = vadd.f32 %v3907_v10, %v4958_v0  ;;  %v1800_v53 = vadd.f32 %v1768_v39, %v4694_v24 }
 0x478   : > { %v1771_v19 = vmax.f32 %v1657_v9, 0.0  ;;  %v1660_v33 = vadd.f32 %v4958_v0, %v1659_v46 }
 0x479   : > { %v1805_v9 = vadd.f32 %v1773_v36, %v4724_v42  ;;  %v1774_v46 = vmax.f32 %v1668_v31, 0.0 }
 0x47c   : > { %v3910_v56 = vpop.f32.mrb[72].mxu0 }
 0x47d   : > { %v1672_v32 = vpop.f32.mrb[73].mxu0  ;;  %v1681_v43 = vadd.f32 %v3910_v56, %v4958_v0  ;;  %v1772_v56 = vmax.f32 %v1660_v33, 0.0 }
 0x47e   : > { %v3911_v5 = vpop.f32.mrb[74].mxu0  ;;  %v1673_v10 = vadd.f32 %v4958_v0, %v1672_v32 }
 0x47f   : > { %v4953_v52 = vpop.f32.mrb[75].mxu0  ;;  %v1777_v24 = vmax.f32 %v1681_v43, 0.0  ;;  %v1684_v32 = vadd.f32 %v3911_v5, %v4958_v0 }
 0x480   : > { %v1775_v42 = vmax.f32 %v1673_v10, 0.0  ;;  %v1676_v5 = vadd.f32 %v4958_v0, %v4953_v52 }
 0x484   : > { %v4960_v17 = vpop.f32.mrb[76].mxu0 }
 0x485   : > { %v4962_v26 = vpop.f32.mrb[77].mxu0 }
 0x486   : > { %v4965_v25 = vpop.f32.mrb[78].mxu0 }
 0x487   : > { %v4968_v51 = vpop.f32.mrb[79].mxu0 }
 0x48c   : > { %v3918_v49 = vpop.f32.mrb[80].mxu0 }
 0x48d   : > { %v1713_v45 = vadd.f32 %v3918_v49, %v4958_v0  ;;  %v1704_v12 = vpop.f32.mrb[81].mxu0 }
 0x48e   : > { %v1705_v37 = vadd.f32 %v4958_v0, %v1704_v12  ;;  %v3919_v47 = vpop.f32.mrb[82].mxu0  ;;  %v1802_v12 = vadd.f32 %v1770_v13, %v4686_v7  ;;  %v1803_v7 = vadd.f32 %v1771_v19, %v4716_v60 }
 0x48f   : > { %v1785_v27 = vmax.f32 %v1713_v45, 0.0  ;;  %v1716_v38 = vadd.f32 %v3919_v47, %v4958_v0  ;;  %v1707_v35 = vpop.f32.mrb[83].mxu0 }
 0x490   : > { %v1783_v18 = vmax.f32 %v1705_v37, 0.0  ;;  %v1708_v49 = vadd.f32 %v4958_v0, %v1707_v35 }
 0x491   : > { %v1817_v48 = vadd.f32 %v1785_v27, %v4802_v28  ;;  %v1786_v54 = vmax.f32 %v1716_v38, 0.0 }
 0x492   : > { %v1815_v1 = vadd.f32 %v1783_v18, %v4794_v23  ;;  %v1784_v50 = vmax.f32 %v1708_v49, 0.0 }
 0x493   : > { %v1833_v45 = vadd.f32 %v1817_v48, %v1801_v3  ;;  %v1818_v37 = vadd.f32 %v1786_v54, %v4790_v61  ;;  %v1778_v54 = vmax.f32 %v1684_v32, 0.0 }
 0x494   : > { %v1831_v47 = vadd.f32 %v1815_v1, %v1799_v34  ;;  %v1816_v28 = vadd.f32 %v1784_v50, %v4798_v20  ;;  %v3922_v27 = vpop.f32.mrb[84].mxu0  ;;  %v1806_v50 = vadd.f32 %v1774_v46, %v4712_v16  ;;  %v1809_v16 = vadd.f32 %v1777_v24, %v4750_v63 }
 0x495   : > { %v1834_v13 = vadd.f32 %v1818_v37, %v1802_v12  ;;  %v1729_v23 = vadd.f32 %v3922_v27, %v4958_v0  ;;  %v1720_v38 = vpop.f32.mrb[85].mxu0  ;;  %v5005_v49 = vmul.f32 0.5, %v1833_v45  ;;  %v1804_v45 = vadd.f32 %v1772_v56, %v4720_v57 }
 0x496   : > { %v1832_v3 = vadd.f32 %v1816_v28, %v1800_v53  ;;  %v1721_v61 = vadd.f32 %v4958_v0, %v1720_v38  ;;  %v3923_v39 = vpop.f32.mrb[86].mxu0  ;;  %v4998_v60 = vmul.f32 0.5, %v1831_v47  ;;  %v1807_v46 = vadd.f32 %v1775_v42, %v4742_v59 }
 0x497   : > { %v4995_v31 = vmul.f32 0.5, %v1834_v13  ;;  %v1789_v34 = vmax.f32 %v1729_v23, 0.0  ;;  %v1732_v20 = vadd.f32 %v3923_v39, %v4958_v0  ;;  %v1723_v35 = vpop.f32.mrb[87].mxu0  ;;  %v1810_v27 = vadd.f32 %v1778_v54, %v4738_v55 }
 0x498   : > { %v5000_v19 = vmul.f32 0.5, %v1832_v3  ;;  %v1787_v36 = vmax.f32 %v1721_v61, 0.0  ;;  %v1724_v18 = vadd.f32 %v4958_v0, %v1723_v35  ;;  %v1776_v13 = vmax.f32 %v1676_v5, 0.0 }
 0x499   : > { %v1821_v33 = vadd.f32 %v1789_v34, %v4828_v8  ;;  %v1790_v48 = vmax.f32 %v1732_v20, 0.0  ;;  %v1869_v53 = vpack.c.bf16 %v4995_v31, %v5005_v49  ;;  %v4143_v8 = vld [vmem:[%s5439_s3 + $0x58] sm:$0xff]   ;;  %v1697_v63 = vadd.f32 %v4960_v17, %v4958_v0 }
 0x49a   : > { %v1819_v12 = vadd.f32 %v1787_v36, %v4820_v40  ;;  %v1788_v43 = vmax.f32 %v1724_v18, 0.0  ;;  %v1868_v1 = vpack.c.bf16 %v5000_v19, %v4998_v60  ;;  %v1700_v42 = vadd.f32 %v4965_v25, %v4958_v0 }
 0x49b   : > { %v1837_v10 = vadd.f32 %v1821_v33, %v1805_v9  ;;  %v1822_v52 = vadd.f32 %v1790_v48, %v4816_v11  ;;  %v1692_v36 = vadd.f32 %v4958_v0, %v4968_v51  ;;  %v1808_v5 = vadd.f32 %v1776_v13, %v4746_v62 }
 0x49c   : > { %v1835_v37 = vadd.f32 %v1819_v12, %v1803_v7  ;;  %v1820_v40 = vadd.f32 %v1788_v43, %v4824_v14  ;;  %v3926_v47 = vpop.f32.mrb[88].mxu0  ;;  %3936 = vmatprep.mubr.msk.bf16.mxu1 %vm679_vm1, %v1868_v1  ;;  %v1781_v48 = vmax.f32 %v1697_v63, 0.0  ;;  %v5490_v63 = vld [vmem:[#allocation5_spill] sm:$0xff] }
 0x49d   : > { %v1838_v28 = vadd.f32 %v1822_v52, %v1806_v50  ;;  %v1745_v9 = vadd.f32 %v3926_v47, %v4958_v0  ;;  %v1736_v11 = vpop.f32.mrb[89].mxu0  ;;  %3937 = vmatmul.mubr.msk.bf16.vlgmr.msra.gmra.mrb[64].mxu1 %vm679_vm1, %v1869_v53  ;;  %v5040_v61 = vmul.f32 0.5, %v1837_v10  ;;  %v1780_v62 = vmax.f32 %v1692_v36, 0.0 }
 0x49e   : > { %v1836_v57 = vadd.f32 %v1820_v40, %v1804_v45  ;;  %v1737_v7 = vadd.f32 %v4958_v0, %v1736_v11  ;;  %v3927_v14 = vpop.f32.mrb[90].mxu0  ;;  %3953 = vmatpush3.bf16.msra.mxu1 %v4950_v44  ;;  %v5033_v24 = vmul.f32 0.5, %v1835_v37  ;;  %v1689_v44 = vadd.f32 %v4958_v0, %v4962_v26 }
 0x49f   : > { %v5030_v56 = vmul.f32 0.5, %v1838_v28  ;;  %v1793_v59 = vmax.f32 %v1745_v9, 0.0  ;;  %v1748_v23 = vadd.f32 %v3927_v14, %v4958_v0  ;;  %v1739_v38 = vpop.f32.mrb[91].mxu0  ;;  %3954 = vmatprep.subr.bf16.mxu1 %v4143_v8 }
 0x4a0   : > { %v5035_v55 = vmul.f32 0.5, %v1836_v57  ;;  %v1791_v32 = vmax.f32 %v1737_v7, 0.0  ;;  %v1740_v3 = vadd.f32 %v4958_v0, %v1739_v38  ;;  %v1779_v51 = vmax.f32 %v1689_v44, 0.0 }
 0x4a1   : > { %v1825_v17 = vadd.f32 %v1793_v59, %v4854_v2  ;;  %v1794_v39 = vmax.f32 %v1748_v23, 0.0  ;;  %v1871_v2 = vpack.c.bf16 %v5030_v56, %v5040_v61  ;;  %v1812_v59 = vadd.f32 %v1780_v62, %v5490_v63  ;;  %v5491_v23 = vld [vmem:[#allocation6_spill] sm:$0xff] }
 0x4a2   : > { %v1823_v34 = vadd.f32 %v1791_v32, %v4846_v29  ;;  %v1792_v20 = vmax.f32 %v1740_v3, 0.0  ;;  %v1870_v35 = vpack.c.bf16 %v5035_v55, %v5033_v24  ;;  %3955 = vmatpush3.bf16.msra.mxu1 %v4143_v8  ;;  %v1811_v11 = vadd.f32 %v1779_v51, %v4768_v41 }
 0x4a3   : > { %v1841_v18 = vadd.f32 %v1825_v17, %v1809_v16  ;;  %v1826_v26 = vadd.f32 %v1794_v39, %v4842_v22  ;;  %v1782_v22 = vmax.f32 %v1700_v42, 0.0  ;;  %v1813_v16 = vadd.f32 %v1781_v48, %v4776_v6  ;;  %v4144_v39 = vld [vmem:[%s5439_s3 + $0x60] sm:$0xff]   ;;  %v4145_v42 = vld [vmem:[%s5439_s3 + $0x68] sm:$0xff]  }
 0x4a4   : > { %v1839_v33 = vadd.f32 %v1823_v34, %v1807_v46  ;;  %v1824_v25 = vadd.f32 %v1792_v20, %v4850_v58  ;;  %v3930_v29 = vpop.f32.mrb[92].mxu0  ;;  %3940 = vmatprep.mubr.msk.bf16.mxu1 %vm679_vm1, %v1870_v35  ;;  %3972 = vmatprep.subr.bf16.mxu0 %v4144_v39  ;;  %v3466_v34 = vld [vmem:[%s5440_s4 + $0x4] ss:$0 sm:$0xff] }
 0x4a5   : > { %v1842_v54 = vadd.f32 %v1826_v26, %v1810_v27  ;;  %v1761_v12 = vadd.f32 %v3930_v29, %v4958_v0  ;;  %v1752_v43 = vpop.f32.mrb[93].mxu0  ;;  %3941 = vmatmul.mubr.msk.bf16.gmra.mrb[68].mxu1 %vm679_vm1, %v1871_v2  ;;  %v5068_v46 = vmul.f32 0.5, %v1841_v18  ;;  %v1814_v7 = vadd.f32 %v1782_v22, %v4764_v4  ;;  %3973 = vmatpush3.bf16.msra.mxu0 %v4144_v39 }
 0x4a6   : > { %v1840_v1 = vadd.f32 %v1824_v25, %v1808_v5  ;;  %v1753_v50 = vadd.f32 %v4958_v0, %v1752_v43  ;;  %v3931_v53 = vpop.f32.mrb[94].mxu0  ;;  %v5062_v45 = vmul.f32 0.5, %v1839_v33  ;;  %3974 = vmatprep.subr.bf16.mxu0 %v4145_v42 }
 0x4a7   : > { %v5059_v10 = vmul.f32 0.5, %v1842_v54  ;;  %v1797_v58 = vmax.f32 %v1761_v12, 0.0  ;;  %v1764_v52 = vadd.f32 %v3931_v53, %v4958_v0  ;;  %v1755_v8 = vpop.f32.mrb[95].mxu0 }
 0x4a8   : > { %v5064_v37 = vmul.f32 0.5, %v1840_v1  ;;  %v1795_v40 = vmax.f32 %v1753_v50, 0.0  ;;  %v1756_v47 = vadd.f32 %v4958_v0, %v1755_v8 }
 0x4a9   : > { %v1829_v28 = vadd.f32 %v1797_v58, %v4880_v21  ;;  %v1798_v9 = vmax.f32 %v1764_v52, 0.0  ;;  %v1873_v6 = vpack.c.bf16 %v5059_v10, %v5068_v46  ;;  %3975 = vmatpush3.bf16.msra.mxu0 %v4145_v42 }
 0x4aa   : > { %v1827_v27 = vadd.f32 %v1795_v40, %v4872_v30  ;;  %v1796_v13 = vmax.f32 %v1756_v47, 0.0  ;;  %v1872_v57 = vpack.c.bf16 %v5064_v37, %v5062_v45 }
 0x4ab   : > { %v1845_v14 = vadd.f32 %v1829_v28, %v1813_v16  ;;  %v1830_v0 = vadd.f32 %v1798_v9, %v4868_v15 }
 0x4ac   : > { %v1843_v21 = vadd.f32 %v1827_v27, %v1811_v11  ;;  %v1828_v38 = vadd.f32 %v1796_v13, %v5491_v23  ;;  %3944 = vmatprep.mubr.msk.bf16.mxu1 %vm679_vm1, %v1872_v57 }
 0x4ad   : > { %v1846_v41 = vadd.f32 %v1830_v0, %v1814_v7  ;;  %3945 = vmatmul.mubr.msk.bf16.gmra.mrb[72].mxu1 %vm679_vm1, %v1873_v6  ;;  %v5089_v15 = vmul.f32 0.5, %v1845_v14 }
 0x4ae   : > { %v1844_v30 = vadd.f32 %v1828_v38, %v1812_v59  ;;  %v5085_v4 = vmul.f32 0.5, %v1843_v21 }
 0x4af   : > { %v5083_v32 = vmul.f32 0.5, %v1846_v41 }
 0x4b0   : > { %v5087_v3 = vmul.f32 0.5, %v1844_v30 }
 0x4b1   : > { %v1875_v17 = vpack.c.bf16 %v5083_v32, %v5089_v15 }
 0x4b2   : > { %v1874_v44 = vpack.c.bf16 %v5087_v3, %v5085_v4 }
 0x4b4   : > { %3948 = vmatprep.mubr.msk.bf16.mxu1 %vm679_vm1, %v1874_v44 }
 0x4b5   : > { %3949 = vmatmul.mubr.msk.bf16.gmra.mrb[76].mxu1 %vm679_vm1, %v1875_v17 }
 0x570   : > { %v3938_v20 = vpop.f32.mrb[64].mxu1 }
 0x571   : > { %v1963_v35 = vadd.f32 %v3938_v20, %v3466_v34  ;;  %v1954_v36 = vpop.f32.mrb[65].mxu1 }
 0x572   : > { %v1955_v18 = vadd.f32 %v3466_v34, %v1954_v36  ;;  %v3939_v26 = vpop.f32.mrb[66].mxu1 }
 0x573   : > { %v1966_v2 = vadd.f32 %v3939_v26, %v3466_v34  ;;  %v1957_v5 = vpop.f32.mrb[67].mxu1  ;;  %v2019_v25 = vmax.f32 %v1963_v35, 0.0 }
 0x574   : > { %v1958_v33 = vadd.f32 %v3466_v34, %v1957_v5  ;;  %v2017_v48 = vmax.f32 %v1955_v18, 0.0 }
 0x575   : > { %v2020_v29 = vmax.f32 %v1966_v2, 0.0 }
 0x576   : > { %v2018_v54 = vmax.f32 %v1958_v33, 0.0 }
 0x577   : > { %v2039_v12 = vpack.c.bf16 %v2020_v29, %v2019_v25  ;;  %v4146_v29 = vld [vmem:[%s5439_s3 + $0x70] sm:$0xff]  }
 0x578   : > { %v2038_v43 = vpack.c.bf16 %v2018_v54, %v2017_v48  ;;  %v3942_v51 = vpop.f32.mrb[68].mxu1  ;;  %v4147_v48 = vld [vmem:[%s5439_s3 + $0x78] sm:$0xff]   ;;  %3992 = vmatprep.subr.bf16.mxu1 %v4146_v29 }
 0x579   : > { %v1979_v22 = vadd.f32 %v3942_v51, %v3466_v34  ;;  %v1970_v1 = vpop.f32.mrb[69].mxu1 }
 0x57a   : > { %v1971_v50 = vadd.f32 %v3466_v34, %v1970_v1  ;;  %v3943_v53 = vpop.f32.mrb[70].mxu1  ;;  %3956 = vmatprep.mubr.msk.bf16.mxu1 %vm679_vm1, %v2038_v43 }
 0x57b   : > { %v1982_v62 = vadd.f32 %v3943_v53, %v3466_v34  ;;  %v1973_v58 = vpop.f32.mrb[71].mxu1  ;;  %3957 = vmatmul.mubr.msk.bf16.vlgmr.msra.gmra.mrb[80].mxu1 %vm679_vm1, %v2039_v12  ;;  %v2023_v8 = vmax.f32 %v1979_v22, 0.0 }
 0x57c   : > { %v1974_v52 = vadd.f32 %v3466_v34, %v1973_v58  ;;  %v2021_v47 = vmax.f32 %v1971_v50, 0.0  ;;  %3993 = vmatpush3.bf16.msra.mxu1 %v4146_v29 }
 0x57d   : > { %v2024_v40 = vmax.f32 %v1982_v62, 0.0  ;;  %3994 = vmatprep.subr.bf16.mxu1 %v4147_v48 }
 0x57e   : > { %v2022_v16 = vmax.f32 %v1974_v52, 0.0 }
 0x57f   : > { %v2041_v28 = vpack.c.bf16 %v2024_v40, %v2023_v8 }
 0x580   : > { %v2040_v9 = vpack.c.bf16 %v2022_v16, %v2021_v47  ;;  %v3946_v11 = vpop.f32.mrb[72].mxu1  ;;  %3995 = vmatpush3.bf16.msra.mxu1 %v4147_v48 }
 0x581   : > { %v1995_v27 = vadd.f32 %v3946_v11, %v3466_v34  ;;  %v1986_v13 = vpop.f32.mrb[73].mxu1 }
 0x582   : > { %v1987_v57 = vadd.f32 %v3466_v34, %v1986_v13  ;;  %v3947_v7 = vpop.f32.mrb[74].mxu1  ;;  %3960 = vmatprep.mubr.msk.bf16.mxu1 %vm679_vm1, %v2040_v9 }
 0x583   : > { %v1998_v14 = vadd.f32 %v3947_v7, %v3466_v34  ;;  %v1989_v0 = vpop.f32.mrb[75].mxu1  ;;  %3961 = vmatmul.mubr.msk.bf16.gmra.mrb[84].mxu1 %vm679_vm1, %v2041_v28  ;;  %v2027_v63 = vmax.f32 %v1995_v27, 0.0 }
 0x584   : > { %v1990_v6 = vadd.f32 %v3466_v34, %v1989_v0  ;;  %v2025_v21 = vmax.f32 %v1987_v57, 0.0 }
 0x585   : > { %v2028_v59 = vmax.f32 %v1998_v14, 0.0 }
 0x586   : > { %v2026_v23 = vmax.f32 %v1990_v6, 0.0 }
 0x587   : > { %v2043_v38 = vpack.c.bf16 %v2028_v59, %v2027_v63 }
 0x588   : > { %v2042_v41 = vpack.c.bf16 %v2026_v23, %v2025_v21  ;;  %v3950_v30 = vpop.f32.mrb[76].mxu1 }
 0x589   : > { %v2011_v44 = vadd.f32 %v3950_v30, %v3466_v34  ;;  %v2002_v17 = vpop.f32.mrb[77].mxu1 }
 0x58a   : > { %v2003_v39 = vadd.f32 %v3466_v34, %v2002_v17  ;;  %v3951_v42 = vpop.f32.mrb[78].mxu1  ;;  %3964 = vmatprep.mubr.msk.bf16.mxu1 %vm679_vm1, %v2042_v41 }
 0x58b   : > { %v2014_v20 = vadd.f32 %v3951_v42, %v3466_v34  ;;  %v2005_v35 = vpop.f32.mrb[79].mxu1  ;;  %3965 = vmatmul.mubr.msk.bf16.gmra.mrb[88].mxu1 %vm679_vm1, %v2043_v38  ;;  %v2031_v18 = vmax.f32 %v2011_v44, 0.0 }
 0x58c   : > { %v2006_v36 = vadd.f32 %v3466_v34, %v2005_v35  ;;  %v2029_v2 = vmax.f32 %v2003_v39, 0.0  ;;  %v5123_v34 = vld [vmem:[%s5440_s4 + $0x5] ss:$0 sm:$0xff] }
 0x58d   : > { %v2032_v26 = vmax.f32 %v2014_v20, 0.0 }
 0x58e   : > { %v2030_v5 = vmax.f32 %v2006_v36, 0.0 }
 0x58f   : > { %v2045_v33 = vpack.c.bf16 %v2032_v26, %v2031_v18 }
 0x590   : > { %v2044_v25 = vpack.c.bf16 %v2030_v5, %v2029_v2 }
 0x592   : > { %3968 = vmatprep.mubr.msk.bf16.mxu1 %vm679_vm1, %v2044_v25 }
 0x593   : > { %3969 = vmatmul.mubr.msk.bf16.gmra.mrb[92].mxu1 %vm679_vm1, %v2045_v33 }
 0x64e   : > { %v3958_v54 = vpop.f32.mrb[80].mxu1 }
 0x64f   : > { %v2133_v12 = vadd.f32 %v3958_v54, %v5123_v34  ;;  %v2124_v43 = vpop.f32.mrb[81].mxu1 }
 0x650   : > { %v2125_v51 = vadd.f32 %v5123_v34, %v2124_v43  ;;  %v3959_v22 = vpop.f32.mrb[82].mxu1 }
 0x651   : > { %v2136_v1 = vadd.f32 %v3959_v22, %v5123_v34  ;;  %v2127_v50 = vpop.f32.mrb[83].mxu1  ;;  %v2189_v58 = vmax.f32 %v2133_v12, 0.0 }
 0x652   : > { %v2187_v53 = vmax.f32 %v2125_v51, 0.0  ;;  %v2128_v62 = vadd.f32 %v5123_v34, %v2127_v50 }
 0x653   : > { %v2190_v52 = vmax.f32 %v2136_v1, 0.0  ;;  %v5139_v9 = vadd.f32 %v2189_v58, %v5005_v49 }
 0x654   : > { %v2188_v8 = vmax.f32 %v2128_v62, 0.0  ;;  %v5133_v47 = vadd.f32 %v2187_v53, %v4998_v60 }
 0x655   : > { %v5130_v40 = vadd.f32 %v2190_v52, %v4995_v31 }
 0x656   : > { %v5136_v16 = vadd.f32 %v2188_v8, %v5000_v19  ;;  %v3962_v28 = vpop.f32.mrb[84].mxu1 }
 0x657   : > { %v2149_v11 = vadd.f32 %v3962_v28, %v5123_v34  ;;  %v2140_v27 = vpop.f32.mrb[85].mxu1  ;;  %v2225_v60 = vpack.c.bf16 %v5130_v40, %v5139_v9 }
 0x658   : > { %v2224_v13 = vpack.c.bf16 %v5136_v16, %v5133_v47  ;;  %v2141_v57 = vadd.f32 %v5123_v34, %v2140_v27  ;;  %v3963_v31 = vpop.f32.mrb[86].mxu1 }
 0x659   : > { %v2152_v7 = vadd.f32 %v3963_v31, %v5123_v34  ;;  %v2143_v19 = vpop.f32.mrb[87].mxu1  ;;  %v2193_v49 = vmax.f32 %v2149_v11, 0.0 }
 0x65a   : > { %v2191_v14 = vmax.f32 %v2141_v57, 0.0  ;;  %v2144_v0 = vadd.f32 %v5123_v34, %v2143_v19  ;;  %3976 = vmatprep.mubr.msk.bf16.mxu0 %vm679_vm1, %v2224_v13 }
 0x65b   : > { %v2194_v6 = vmax.f32 %v2152_v7, 0.0  ;;  %3977 = vmatmul.mubr.msk.bf16.vlgmr.msra.gmra.mrb[96].mxu0 %vm679_vm1, %v2225_v60  ;;  %v5161_v41 = vadd.f32 %v2193_v49, %v5040_v61 }
 0x65c   : > { %v2192_v63 = vmax.f32 %v2144_v0, 0.0  ;;  %v5155_v21 = vadd.f32 %v2191_v14, %v5033_v24 }
 0x65d   : > { %v5152_v59 = vadd.f32 %v2194_v6, %v5030_v56 }
 0x65e   : > { %v5158_v23 = vadd.f32 %v2192_v63, %v5035_v55  ;;  %v3966_v38 = vpop.f32.mrb[88].mxu1 }
 0x65f   : > { %v2165_v30 = vadd.f32 %v3966_v38, %v5123_v34  ;;  %v2156_v44 = vpop.f32.mrb[89].mxu1  ;;  %v2227_v24 = vpack.c.bf16 %v5152_v59, %v5161_v41 }
 0x660   : > { %v2226_v17 = vpack.c.bf16 %v5158_v23, %v5155_v21  ;;  %v2157_v39 = vadd.f32 %v5123_v34, %v2156_v44  ;;  %v3967_v56 = vpop.f32.mrb[90].mxu1 }
 0x661   : > { %v2168_v42 = vadd.f32 %v3967_v56, %v5123_v34  ;;  %v2159_v55 = vpop.f32.mrb[91].mxu1  ;;  %v2197_v61 = vmax.f32 %v2165_v30, 0.0 }
 0x662   : > { %v2195_v20 = vmax.f32 %v2157_v39, 0.0  ;;  %v2160_v35 = vadd.f32 %v5123_v34, %v2159_v55  ;;  %3980 = vmatprep.mubr.msk.bf16.mxu0 %vm679_vm1, %v2226_v17 }
 0x663   : > { %v2198_v36 = vmax.f32 %v2168_v42, 0.0  ;;  %3981 = vmatmul.mubr.msk.bf16.gmra.mrb[100].mxu0 %vm679_vm1, %v2227_v24  ;;  %v5183_v25 = vadd.f32 %v2197_v61, %v5068_v46 }
 0x664   : > { %v2196_v18 = vmax.f32 %v2160_v35, 0.0  ;;  %v5177_v2 = vadd.f32 %v2195_v20, %v5062_v45 }
 0x665   : > { %v5174_v26 = vadd.f32 %v2198_v36, %v5059_v10 }
 0x666   : > { %v5180_v5 = vadd.f32 %v2196_v18, %v5064_v37  ;;  %v3970_v33 = vpop.f32.mrb[92].mxu1 }
 0x667   : > { %v2181_v29 = vadd.f32 %v3970_v33, %v5123_v34  ;;  %v2172_v48 = vpop.f32.mrb[93].mxu1  ;;  %v2229_v45 = vpack.c.bf16 %v5174_v26, %v5183_v25 }
 0x668   : > { %v2228_v54 = vpack.c.bf16 %v5180_v5, %v5177_v2  ;;  %v2173_v12 = vadd.f32 %v5123_v34, %v2172_v48  ;;  %v3971_v10 = vpop.f32.mrb[94].mxu1 }
 0x669   : > { %v2184_v43 = vadd.f32 %v3971_v10, %v5123_v34  ;;  %v2175_v37 = vpop.f32.mrb[95].mxu1  ;;  %v2201_v46 = vmax.f32 %v2181_v29, 0.0 }
 0x66a   : > { %v2199_v51 = vmax.f32 %v2173_v12, 0.0  ;;  %v2176_v22 = vadd.f32 %v5123_v34, %v2175_v37  ;;  %3984 = vmatprep.mubr.msk.bf16.mxu0 %vm679_vm1, %v2228_v54 }
 0x66b   : > { %v2202_v1 = vmax.f32 %v2184_v43, 0.0  ;;  %3985 = vmatmul.mubr.msk.bf16.gmra.mrb[104].mxu0 %vm679_vm1, %v2229_v45  ;;  %v5205_v52 = vadd.f32 %v2201_v46, %v5089_v15 }
 0x66c   : > { %v2200_v50 = vmax.f32 %v2176_v22, 0.0  ;;  %v5199_v62 = vadd.f32 %v2199_v51, %v5085_v4 }
 0x66d   : > { %v5196_v53 = vadd.f32 %v2202_v1, %v5083_v32  ;;  %v3498_v32 = vld [vmem:[%s5440_s4 + $0x6] ss:$0 sm:$0xff] }
 0x66e   : > { %v5202_v58 = vadd.f32 %v2200_v50, %v5087_v3 }
 0x66f   : > { %v2231_v8 = vpack.c.bf16 %v5196_v53, %v5205_v52 }
 0x670   : > { %v2230_v34 = vpack.c.bf16 %v5202_v58, %v5199_v62 }
 0x672   : > { %3988 = vmatprep.mubr.msk.bf16.mxu0 %vm679_vm1, %v2230_v34 }
 0x673   : > { %3989 = vmatmul.mubr.msk.bf16.gmra.mrb[108].mxu0 %vm679_vm1, %v2231_v8 }
 0x72e   : > { %v3978_v4 = vpop.f32.mrb[96].mxu0 }
 0x72f   : > { %v2319_v3 = vadd.f32 %v3978_v4, %v3498_v32  ;;  %v2310_v28 = vpop.f32.mrb[97].mxu0 }
 0x730   : > { %v2311_v11 = vadd.f32 %v3498_v32, %v2310_v28  ;;  %v3979_v15 = vpop.f32.mrb[98].mxu0 }
 0x731   : > { %v2322_v27 = vadd.f32 %v3979_v15, %v3498_v32  ;;  %v2313_v13 = vpop.f32.mrb[99].mxu0  ;;  %v2375_v31 = vmax.f32 %v2319_v3, 0.0 }
 0x732   : > { %v2314_v57 = vadd.f32 %v3498_v32, %v2313_v13  ;;  %v2373_v7 = vmax.f32 %v2311_v11, 0.0 }
 0x733   : > { %v2376_v60 = vmax.f32 %v2322_v27, 0.0 }
 0x734   : > { %v2374_v19 = vmax.f32 %v2314_v57, 0.0 }
 0x735   : > { %v2395_v14 = vpack.c.bf16 %v2376_v60, %v2375_v31  ;;  %v4148_v60 = vld [vmem:[%s5439_s3 + $0x80] sm:$0xff]  }
 0x736   : > { %v2394_v0 = vpack.c.bf16 %v2374_v19, %v2373_v7  ;;  %v3982_v49 = vpop.f32.mrb[100].mxu0  ;;  %4012 = vmatprep.subr.bf16.mxu0 %v4148_v60  ;;  %v4150_v7 = vld [vmem:[%s5439_s3 + $0x90] sm:$0xff]   ;;  %v4151_v19 = vld [vmem:[%s5439_s3 + $0x98] sm:$0xff]  }
 0x737   : > { %v2335_v6 = vadd.f32 %v3982_v49, %v3498_v32  ;;  %v2326_v63 = vpop.f32.mrb[101].mxu0  ;;  %4013 = vmatpush3.bf16.msra.mxu0 %v4148_v60  ;;  %4024 = vmatprep.subr.bf16.mxu1 %v4150_v7 }
 0x738   : > { %v2327_v38 = vadd.f32 %v3498_v32, %v2326_v63  ;;  %v3983_v30 = vpop.f32.mrb[102].mxu0  ;;  %3996 = vmatprep.mubr.msk.bf16.mxu1 %vm679_vm1, %v2394_v0 }
 0x739   : > { %v2338_v44 = vadd.f32 %v3983_v30, %v3498_v32  ;;  %v2329_v17 = vpop.f32.mrb[103].mxu0  ;;  %3997 = vmatmul.mubr.msk.bf16.vlgmr.msra.gmra.mrb[96].mxu1 %vm679_vm1, %v2395_v14  ;;  %v2379_v56 = vmax.f32 %v2335_v6, 0.0 }
 0x73a   : > { %v2330_v39 = vadd.f32 %v3498_v32, %v2329_v17  ;;  %v2377_v42 = vmax.f32 %v2327_v38, 0.0  ;;  %4025 = vmatpush3.bf16.msra.mxu1 %v4150_v7  ;;  %v3514_v38 = vld [vmem:[%s5440_s4 + $0x7] ss:$0 sm:$0xff] }
 0x73b   : > { %v2380_v24 = vmax.f32 %v2338_v44, 0.0  ;;  %4026 = vmatprep.subr.bf16.mxu1 %v4151_v19 }
 0x73c   : > { %v2378_v55 = vmax.f32 %v2330_v39, 0.0 }
 0x73d   : > { %v2397_v20 = vpack.c.bf16 %v2380_v24, %v2379_v56 }
 0x73e   : > { %v2396_v35 = vpack.c.bf16 %v2378_v55, %v2377_v42  ;;  %v3986_v61 = vpop.f32.mrb[104].mxu0  ;;  %4027 = vmatpush3.bf16.msra.mxu1 %v4151_v19 }
 0x73f   : > { %v2351_v36 = vadd.f32 %v3986_v61, %v3498_v32  ;;  %v2342_v18 = vpop.f32.mrb[105].mxu0 }
 0x740   : > { %v2343_v33 = vadd.f32 %v3498_v32, %v2342_v18  ;;  %v3987_v29 = vpop.f32.mrb[106].mxu0  ;;  %4000 = vmatprep.mubr.msk.bf16.mxu1 %vm679_vm1, %v2396_v35 }
 0x741   : > { %v2354_v48 = vadd.f32 %v3987_v29, %v3498_v32  ;;  %v2345_v54 = vpop.f32.mrb[107].mxu0  ;;  %4001 = vmatmul.mubr.msk.bf16.gmra.mrb[100].mxu1 %vm679_vm1, %v2397_v20  ;;  %v2383_v10 = vmax.f32 %v2351_v36, 0.0 }
 0x742   : > { %v2346_v12 = vadd.f32 %v3498_v32, %v2345_v54  ;;  %v2381_v43 = vmax.f32 %v2343_v33, 0.0 }
 0x743   : > { %v2384_v45 = vmax.f32 %v2354_v48, 0.0 }
 0x744   : > { %v2382_v37 = vmax.f32 %v2346_v12, 0.0 }
 0x745   : > { %v2399_v51 = vpack.c.bf16 %v2384_v45, %v2383_v10 }
 0x746   : > { %v2398_v22 = vpack.c.bf16 %v2382_v37, %v2381_v43  ;;  %v3990_v46 = vpop.f32.mrb[108].mxu0 }
 0x747   : > { %v2367_v1 = vadd.f32 %v3990_v46, %v3498_v32  ;;  %v2358_v50 = vpop.f32.mrb[109].mxu0 }
 0x748   : > { %v2359_v34 = vadd.f32 %v3498_v32, %v2358_v50  ;;  %v3991_v8 = vpop.f32.mrb[110].mxu0  ;;  %4004 = vmatprep.mubr.msk.bf16.mxu1 %vm679_vm1, %v2398_v22 }
 0x749   : > { %v2370_v4 = vadd.f32 %v3991_v8, %v3498_v32  ;;  %v2361_v3 = vpop.f32.mrb[111].mxu0  ;;  %4005 = vmatmul.mubr.msk.bf16.gmra.mrb[104].mxu1 %vm679_vm1, %v2399_v51  ;;  %v2387_v11 = vmax.f32 %v2367_v1, 0.0 }
 0x74a   : > { %v2362_v28 = vadd.f32 %v3498_v32, %v2361_v3  ;;  %v2385_v27 = vmax.f32 %v2359_v34, 0.0  ;;  %v4149_v32 = vld [vmem:[%s5439_s3 + $0x88] sm:$0xff]  }
 0x74b   : > { %v2388_v15 = vmax.f32 %v2370_v4, 0.0  ;;  %4014 = vmatprep.subr.bf16.mxu0 %v4149_v32 }
 0x74c   : > { %v2386_v13 = vmax.f32 %v2362_v28, 0.0  ;;  %4015 = vmatpush3.bf16.msra.mxu0 %v4149_v32 }
 0x74d   : > { %v2401_v57 = vpack.c.bf16 %v2388_v15, %v2387_v11 }
 0x74e   : > { %v2400_v31 = vpack.c.bf16 %v2386_v13, %v2385_v27 }
 0x750   : > { %4008 = vmatprep.mubr.msk.bf16.mxu1 %vm679_vm1, %v2400_v31 }
 0x751   : > { %4009 = vmatmul.mubr.msk.bf16.gmra.mrb[108].mxu1 %vm679_vm1, %v2401_v57 }
 0x80c   : > { %v3998_v14 = vpop.f32.mrb[96].mxu1 }
 0x80d   : > { %v2480_v0 = vpop.f32.mrb[97].mxu1  ;;  %v2489_v39 = vadd.f32 %v3998_v14, %v3514_v38 }
 0x80e   : > { %v3999_v49 = vpop.f32.mrb[98].mxu1  ;;  %v2481_v56 = vadd.f32 %v3514_v38, %v2480_v0 }
 0x80f   : > { %v2483_v6 = vpop.f32.mrb[99].mxu1  ;;  %v2492_v24 = vadd.f32 %v3999_v49, %v3514_v38  ;;  %v2545_v42 = vmax.f32 %v2489_v39, 0.0 }
 0x810   : > { %v2484_v55 = vadd.f32 %v3514_v38, %v2483_v6  ;;  %v2543_v35 = vmax.f32 %v2481_v56, 0.0 }
 0x811   : > { %v2546_v29 = vmax.f32 %v2492_v24, 0.0  ;;  %v2561_v10 = vadd.f32 %v2545_v42, %v5139_v9 }
 0x812   : > { %v2544_v45 = vmax.f32 %v2484_v55, 0.0  ;;  %v2559_v51 = vadd.f32 %v2543_v35, %v5133_v47 }
 0x813   : > { %v2562_v3 = vadd.f32 %v2546_v29, %v5130_v40 }
 0x814   : > { %v4002_v63 = vpop.f32.mrb[100].mxu1  ;;  %v2560_v15 = vadd.f32 %v2544_v45, %v5136_v16 }
 0x815   : > { %v2496_v30 = vpop.f32.mrb[101].mxu1  ;;  %v2505_v22 = vadd.f32 %v4002_v63, %v3514_v38 }
 0x816   : > { %v4003_v44 = vpop.f32.mrb[102].mxu1  ;;  %v2497_v50 = vadd.f32 %v3514_v38, %v2496_v30 }
 0x817   : > { %v2499_v17 = vpop.f32.mrb[103].mxu1  ;;  %v2508_v34 = vadd.f32 %v4003_v44, %v3514_v38  ;;  %v2549_v57 = vmax.f32 %v2505_v22, 0.0 }
 0x818   : > { %v2500_v28 = vadd.f32 %v3514_v38, %v2499_v17  ;;  %v2547_v32 = vmax.f32 %v2497_v50, 0.0 }
 0x819   : > { %v2550_v7 = vmax.f32 %v2508_v34, 0.0  ;;  %v2565_v44 = vadd.f32 %v2549_v57, %v5161_v41 }
 0x81a   : > { %v2548_v40 = vmax.f32 %v2500_v28, 0.0  ;;  %v2563_v24 = vadd.f32 %v2547_v32, %v5155_v21 }
 0x81b   : > { %v2566_v35 = vadd.f32 %v2550_v7, %v5152_v59 }
 0x81c   : > { %v4006_v20 = vpop.f32.mrb[104].mxu1 }
 0x81d   : > { %v2521_v61 = vadd.f32 %v4006_v20, %v3514_v38  ;;  %v2512_v36 = vpop.f32.mrb[105].mxu1 }
 0x81e   : > { %v2513_v18 = vadd.f32 %v3514_v38, %v2512_v36  ;;  %v4007_v33 = vpop.f32.mrb[106].mxu1  ;;  %v2564_v36 = vadd.f32 %v2548_v40, %v5158_v23  ;;  %v3542_v40 = vld [vmem:[%s5440_s4 + $0x9] ss:$0 sm:$0xff] }
 0x81f   : > { %v2553_v48 = vmax.f32 %v2521_v61, 0.0  ;;  %v2524_v54 = vadd.f32 %v4007_v33, %v3514_v38  ;;  %v2515_v12 = vpop.f32.mrb[107].mxu1 }
 0x820   : > { %v2551_v43 = vmax.f32 %v2513_v18, 0.0  ;;  %v2516_v37 = vadd.f32 %v3514_v38, %v2515_v12 }
 0x821   : > { %v2569_v46 = vadd.f32 %v2553_v48, %v5183_v25  ;;  %v2554_v1 = vmax.f32 %v2524_v54, 0.0  ;;  %v3530_v54 = vld [vmem:[%s5440_s4 + $0x8] ss:$0 sm:$0xff] }
 0x822   : > { %v2567_v8 = vadd.f32 %v2551_v43, %v5177_v2  ;;  %v2552_v4 = vmax.f32 %v2516_v37, 0.0 }
 0x823   : > { %v2577_v11 = vadd.f32 %v2569_v46, %v2561_v10  ;;  %v2570_v9 = vadd.f32 %v2554_v1, %v5174_v26 }
 0x824   : > { %v2575_v27 = vadd.f32 %v2567_v8, %v2559_v51  ;;  %v2568_v47 = vadd.f32 %v2552_v4, %v5180_v5  ;;  %v4010_v13 = vpop.f32.mrb[108].mxu1 }
 0x825   : > { %v2578_v25 = vadd.f32 %v2570_v9, %v2562_v3  ;;  %v2537_v31 = vadd.f32 %v4010_v13, %v3514_v38  ;;  %v2528_v60 = vpop.f32.mrb[109].mxu1  ;;  %v5254_v17 = vmul.f32 0.5, %v2577_v11 }
 0x826   : > { %v2576_v2 = vadd.f32 %v2568_v47, %v2560_v15  ;;  %v2529_v19 = vadd.f32 %v3514_v38, %v2528_v60  ;;  %v4011_v14 = vpop.f32.mrb[110].mxu1  ;;  %v5249_v16 = vmul.f32 0.5, %v2575_v27 }
 0x827   : > { %v5247_v0 = vmul.f32 0.5, %v2578_v25  ;;  %v2557_v49 = vmax.f32 %v2537_v31, 0.0  ;;  %v2540_v26 = vadd.f32 %v4011_v14, %v3514_v38  ;;  %v2531_v6 = vpop.f32.mrb[111].mxu1  ;;  %v4154_v14 = vld [vmem:[%s5439_s3 + $0xb0] sm:$0xff]  }
 0x828   : > { %v5251_v63 = vmul.f32 0.5, %v2576_v2  ;;  %v2555_v5 = vmax.f32 %v2529_v19, 0.0  ;;  %v2532_v30 = vadd.f32 %v3514_v38, %v2531_v6  ;;  %v4153_v19 = vld [vmem:[%s5439_s3 + $0xa8] sm:$0xff]   ;;  %4048 = vmatprep.subr.bf16.mxu1 %v4154_v14 }
 0x829   : > { %v2573_v39 = vadd.f32 %v2557_v49, %v5205_v52  ;;  %v2558_v56 = vmax.f32 %v2540_v26, 0.0  ;;  %v2597_v38 = vpack.c.bf16 %v5247_v0, %v5254_v17 }
 0x82a   : > { %v2571_v42 = vadd.f32 %v2555_v5, %v5199_v62  ;;  %v2556_v55 = vmax.f32 %v2532_v30, 0.0  ;;  %v2596_v20 = vpack.c.bf16 %v5251_v63, %v5249_v16 }
 0x82b   : > { %v2581_v61 = vadd.f32 %v2573_v39, %v2565_v44  ;;  %v2574_v41 = vadd.f32 %v2558_v56, %v5196_v53 }
 0x82c   : > { %v2579_v52 = vadd.f32 %v2571_v42, %v2563_v24  ;;  %v2572_v18 = vadd.f32 %v2556_v55, %v5202_v58  ;;  %4016 = vmatprep.mubr.msk.bf16.mxu0 %vm679_vm1, %v2596_v20  ;;  %v4152_v58 = vld [vmem:[%s5439_s3 + $0xa0] sm:$0xff]  }
 0x82d   : > { %v2582_v21 = vadd.f32 %v2574_v41, %v2566_v35  ;;  %4017 = vmatmul.mubr.msk.bf16.vlgmr.msra.gmra.mrb[112].mxu0 %vm679_vm1, %v2597_v38  ;;  %v5275_v48 = vmul.f32 0.5, %v2581_v61  ;;  %4036 = vmatprep.subr.bf16.mxu0 %v4152_v58 }
 0x82e   : > { %v2580_v62 = vadd.f32 %v2572_v18, %v2564_v36  ;;  %v5271_v59 = vmul.f32 0.5, %v2579_v52  ;;  %4037 = vmatpush3.bf16.msra.mxu0 %v4152_v58 }
 0x82f   : > { %v5269_v33 = vmul.f32 0.5, %v2582_v21  ;;  %4038 = vmatprep.subr.bf16.mxu0 %v4153_v19 }
 0x830   : > { %v5273_v29 = vmul.f32 0.5, %v2580_v62 }
 0x831   : > { %v2599_v53 = vpack.c.bf16 %v5269_v33, %v5275_v48 }
 0x832   : > { %v2598_v23 = vpack.c.bf16 %v5273_v29, %v5271_v59  ;;  %4039 = vmatpush3.bf16.msra.mxu0 %v4153_v19 }
 0x834   : > { %4020 = vmatprep.mubr.msk.bf16.mxu0 %vm679_vm1, %v2598_v23 }
 0x835   : > { %4021 = vmatmul.mubr.msk.bf16.gmra.mrb[116].mxu0 %vm679_vm1, %v2599_v53 }
 0x900   : > { %v4018_v12 = vpop.f32.mrb[112].mxu0 }
 0x901   : > { %v2675_v10 = vadd.f32 %v4018_v12, %v3530_v54  ;;  %v2666_v45 = vpop.f32.mrb[113].mxu0 }
 0x902   : > { %v2667_v43 = vadd.f32 %v3530_v54, %v2666_v45  ;;  %v4019_v37 = vpop.f32.mrb[114].mxu0 }
 0x903   : > { %v2678_v51 = vadd.f32 %v4019_v37, %v3530_v54  ;;  %v2669_v22 = vpop.f32.mrb[115].mxu0  ;;  %v2699_v1 = vmax.f32 %v2675_v10, 0.0 }
 0x904   : > { %v2670_v46 = vadd.f32 %v3530_v54, %v2669_v22  ;;  %v2697_v34 = vmax.f32 %v2667_v43, 0.0 }
 0x905   : > { %v2700_v50 = vmax.f32 %v2678_v51, 0.0 }
 0x906   : > { %v2698_v8 = vmax.f32 %v2670_v46, 0.0 }
 0x907   : > { %v2711_v4 = vpack.c.bf16 %v2700_v50, %v2699_v1 }
 0x908   : > { %v2710_v3 = vpack.c.bf16 %v2698_v8, %v2697_v34  ;;  %v4022_v28 = vpop.f32.mrb[116].mxu0 }
 0x909   : > { %v2691_v11 = vadd.f32 %v4022_v28, %v3530_v54  ;;  %v2682_v9 = vpop.f32.mrb[117].mxu0 }
 0x90a   : > { %v2683_v15 = vadd.f32 %v3530_v54, %v2682_v9  ;;  %v4023_v27 = vpop.f32.mrb[118].mxu0  ;;  %4028 = vmatprep.mubr.msk.bf16.mxu1 %vm679_vm1, %v2710_v3 }
 0x90b   : > { %v2694_v47 = vadd.f32 %v4023_v27, %v3530_v54  ;;  %v2685_v13 = vpop.f32.mrb[119].mxu0  ;;  %4029 = vmatmul.mubr.msk.bf16.vlgmr.msra.gmra.mrb[112].mxu1 %vm679_vm1, %v2711_v4  ;;  %v2703_v25 = vmax.f32 %v2691_v11, 0.0 }
 0x90c   : > { %v2686_v57 = vadd.f32 %v3530_v54, %v2685_v13  ;;  %v2701_v60 = vmax.f32 %v2683_v15, 0.0  ;;  %4049 = vmatpush3.bf16.msra.mxu1 %v4154_v14 }
 0x90d   : > { %v2704_v31 = vmax.f32 %v2694_v47, 0.0 }
 0x90e   : > { %v2702_v32 = vmax.f32 %v2686_v57, 0.0 }
 0x90f   : > { %v2713_v7 = vpack.c.bf16 %v2704_v31, %v2703_v25 }
 0x910   : > { %v2712_v2 = vpack.c.bf16 %v2702_v32, %v2701_v60 }
 0x912   : > { %4032 = vmatprep.mubr.msk.bf16.mxu1 %vm679_vm1, %v2712_v2 }
 0x913   : > { %4033 = vmatmul.mubr.msk.bf16.gmra.mrb[116].mxu1 %vm679_vm1, %v2713_v7 }
 0x9de   : > { %v4030_v49 = vpop.f32.mrb[112].mxu1 }
 0x9df   : > { %v2789_v26 = vadd.f32 %v4030_v49, %v3542_v40  ;;  %v2780_v6 = vpop.f32.mrb[113].mxu1 }
 0x9e0   : > { %v2781_v5 = vadd.f32 %v3542_v40, %v2780_v6  ;;  %v4031_v30 = vpop.f32.mrb[114].mxu1  ;;  %v4225_v6 = vmov 0.0  }
 0x9e1   : > { %v2792_v44 = vadd.f32 %v4031_v30, %v3542_v40  ;;  %v2783_v39 = vpop.f32.mrb[115].mxu1  ;;  %v2813_v42 = vmax.f32 %v2789_v26, 0.0  ;;  %4060 = vmatprep.subr.bf16.mxu0 %v4225_v6  ;;  %v4157_v30 = vld [vmem:[%s5441_s5 + $0x8] sm:$0xff]  }
 0x9e2   : > { %v2811_v56 = vmax.f32 %v2781_v5, 0.0  ;;  %v2784_v24 = vadd.f32 %v3542_v40, %v2783_v39  ;;  %v4156_v5 = vld [vmem:[%s5441_s5] sm:$0xff]  }
 0x9e3   : > { %v2814_v55 = vmax.f32 %v2792_v44, 0.0  ;;  %v5312_v36 = vadd.f32 %v2813_v42, %v5254_v17  ;;  %v4160_v44 = vld [vmem:[%s5443_s7] sm:$0xff]  }
 0x9e4   : > { %v2812_v20 = vmax.f32 %v2784_v24, 0.0  ;;  %v5306_v38 = vadd.f32 %v2811_v56, %v5249_v16  ;;  %v3566_v24 = vld [vmem:[%s5440_s4 + $0xb] ss:$0 sm:$0xff] }
 0x9e5   : > { %v5303_v35 = vadd.f32 %v2814_v55, %v5247_v0 }
 0x9e6   : > { %v5309_v61 = vadd.f32 %v2812_v20, %v5251_v63  ;;  %v4034_v41 = vpop.f32.mrb[116].mxu1 }
 0x9e7   : > { %v2805_v52 = vadd.f32 %v4034_v41, %v3542_v40  ;;  %v2796_v18 = vpop.f32.mrb[117].mxu1  ;;  %v2833_v0 = vpack.c.bf16 %v5303_v35, %v5312_v36 }
 0x9e8   : > { %v2832_v21 = vpack.c.bf16 %v5309_v61, %v5306_v38  ;;  %v2797_v62 = vadd.f32 %v3542_v40, %v2796_v18  ;;  %v4035_v23 = vpop.f32.mrb[118].mxu1 }
 0x9e9   : > { %v2808_v53 = vadd.f32 %v4035_v23, %v3542_v40  ;;  %v2799_v16 = vpop.f32.mrb[119].mxu1  ;;  %v2817_v63 = vmax.f32 %v2805_v52, 0.0 }
 0x9ea   : > { %v2815_v58 = vmax.f32 %v2797_v62, 0.0  ;;  %v2800_v54 = vadd.f32 %v3542_v40, %v2799_v16  ;;  %4040 = vmatprep.mubr.msk.bf16.mxu0 %vm679_vm1, %v2832_v21 }
 0x9eb   : > { %v2818_v12 = vmax.f32 %v2808_v53, 0.0  ;;  %4041 = vmatmul.mubr.msk.bf16.vlgmr.msra.gmra.mrb[120].mxu0 %vm679_vm1, %v2833_v0  ;;  %v5330_v37 = vadd.f32 %v2817_v63, %v5275_v48 }
 0x9ec   : > { %v2816_v17 = vmax.f32 %v2800_v54, 0.0  ;;  %v5324_v45 = vadd.f32 %v2815_v58, %v5271_v59  ;;  %v3554_v59 = vld [vmem:[%s5440_s4 + $0xa] ss:$0 sm:$0xff]  ;;  %4061 = vmatpush3.bf16.msra.mxu0 %v4156_v5 }
 0x9ed   : > { %v5321_v10 = vadd.f32 %v2818_v12, %v5269_v33  ;;  %v4155_v33 = vld [vmem:[%s5439_s3 + $0xb8] sm:$0xff]   ;;  %4062 = vmatprep.subr.bf16.mxu0 %v4225_v6 }
 0x9ee   : > { %v5327_v43 = vadd.f32 %v2816_v17, %v5273_v29  ;;  %4050 = vmatprep.subr.bf16.mxu1 %v4155_v33 }
 0x9ef   : > { %v2835_v22 = vpack.c.bf16 %v5321_v10, %v5330_v37  ;;  %4051 = vmatpush3.bf16.msra.mxu1 %v4155_v33 }
 0x9f0   : > { %v2834_v51 = vpack.c.bf16 %v5327_v43, %v5324_v45  ;;  %4076 = vmatprep.subr.bf16.mxu1 %v4225_v6  ;;  %4063 = vmatpush3.bf16.msra.mxu0 %v4157_v30 }
 0x9f1   : > { %4068 = vmatprep.subr.bf16.mxu0 %v4225_v6 }
 0x9f2   : > { %4044 = vmatprep.mubr.msk.bf16.mxu0 %vm679_vm1, %v2834_v51 }
 0x9f3   : > { %4045 = vmatmul.mubr.msk.bf16.gmra.mrb[124].mxu0 %vm679_vm1, %v2835_v22 }
 0x9f4   : > { %4064 = vmatprep.mubr.msk.bf16.mxu0 %vm4226_vm2, %v4225_v6 }
 0xabe   : > { %v4042_v29 = vpop.f32.mrb[120].mxu0 }
 0xabf   : > { %v2911_v48 = vadd.f32 %v4042_v29, %v3554_v59  ;;  %v2902_v46 = vpop.f32.mrb[121].mxu0 }
 0xac0   : > { %v2903_v1 = vadd.f32 %v3554_v59, %v2902_v46  ;;  %v4043_v50 = vpop.f32.mrb[122].mxu0 }
 0xac1   : > { %v2914_v34 = vadd.f32 %v4043_v50, %v3554_v59  ;;  %v2905_v8 = vpop.f32.mrb[123].mxu0  ;;  %v2935_v3 = vmax.f32 %v2911_v48, 0.0 }
 0xac2   : > { %v2906_v4 = vadd.f32 %v3554_v59, %v2905_v8  ;;  %v2933_v11 = vmax.f32 %v2903_v1, 0.0 }
 0xac3   : > { %v2936_v28 = vmax.f32 %v2914_v34, 0.0 }
 0xac4   : > { %v2934_v9 = vmax.f32 %v2906_v4, 0.0 }
 0xac5   : > { %v2947_v15 = vpack.c.bf16 %v2936_v28, %v2935_v3 }
 0xac6   : > { %v2946_v27 = vpack.c.bf16 %v2934_v9, %v2933_v11  ;;  %v4046_v47 = vpop.f32.mrb[124].mxu0 }
 0xac7   : > { %v2927_v13 = vadd.f32 %v4046_v47, %v3554_v59  ;;  %v2918_v57 = vpop.f32.mrb[125].mxu0 }
 0xac8   : > { %v2919_v25 = vadd.f32 %v3554_v59, %v2918_v57  ;;  %v4047_v31 = vpop.f32.mrb[126].mxu0  ;;  %4052 = vmatprep.mubr.msk.bf16.mxu1 %vm679_vm1, %v2946_v27 }
 0xac9   : > { %v2930_v60 = vadd.f32 %v4047_v31, %v3554_v59  ;;  %v2921_v32 = vpop.f32.mrb[127].mxu0  ;;  %4053 = vmatmul.mubr.msk.bf16.vlgmr.msra.gmra.mrb[120].mxu1 %vm679_vm1, %v2947_v15  ;;  %v2939_v2 = vmax.f32 %v2927_v13, 0.0 }
 0xaca   : > { %v2922_v7 = vadd.f32 %v3554_v59, %v2921_v32  ;;  %v2937_v14 = vmax.f32 %v2919_v25, 0.0  ;;  %4077 = vmatpush3.bf16.msra.mxu1 %v4160_v44 }
 0xacb   : > { %v2940_v19 = vmax.f32 %v2930_v60, 0.0 }
 0xacc   : > { %v2938_v40 = vmax.f32 %v2922_v7, 0.0 }
 0xacd   : > { %v2949_v49 = vpack.c.bf16 %v2940_v19, %v2939_v2  ;;  %v3584_v19 = vld [vmem:[%s5444_s8] ss:$0 sm:$0xff] }
 0xace   : > { %v2948_v26 = vpack.c.bf16 %v2938_v40, %v2937_v14 }
 0xad0   : > { %4056 = vmatprep.mubr.msk.bf16.mxu1 %vm679_vm1, %v2948_v26 }
 0xad1   : > { %4057 = vmatmul.mubr.msk.bf16.gmra.mrb[124].mxu1 %vm679_vm1, %v2949_v49 }
 0xad2   : > { %4078 = vmatprep.mubr.msk.bf16.mxu1 %vm4226_vm2, %v4225_v6 }
 0xb9c   : > { %v4054_v39 = vpop.f32.mrb[120].mxu1 }
 0xb9d   : > { %v3016_v56 = vpop.f32.mrb[121].mxu1  ;;  %v3025_v20 = vadd.f32 %v4054_v39, %v3566_v24 }
 0xb9e   : > { %v4055_v42 = vpop.f32.mrb[122].mxu1  ;;  %v3017_v41 = vadd.f32 %v3566_v24, %v3016_v56 }
 0xb9f   : > { %v3019_v55 = vpop.f32.mrb[123].mxu1  ;;  %v3028_v52 = vadd.f32 %v4055_v42, %v3566_v24  ;;  %v3049_v62 = vmax.f32 %v3025_v20, 0.0 }
 0xba0   : > { %v3020_v18 = vadd.f32 %v3566_v24, %v3019_v55  ;;  %v3047_v53 = vmax.f32 %v3017_v41, 0.0 }
 0xba1   : > { %v3050_v54 = vmax.f32 %v3028_v52, 0.0  ;;  %v3057_v59 = vadd.f32 %v3049_v62, %v5312_v36 }
 0xba2   : > { %v3048_v51 = vmax.f32 %v3020_v18, 0.0  ;;  %v3055_v46 = vadd.f32 %v3047_v53, %v5306_v38 }
 0xba3   : > { %v3058_v34 = vadd.f32 %v3050_v54, %v5303_v35 }
 0xba4   : > { %v4058_v21 = vpop.f32.mrb[124].mxu1  ;;  %v3056_v3 = vadd.f32 %v3048_v51, %v5309_v61  ;;  %v4159_v61 = vld [vmem:[%s5441_s5 + $0x18] sm:$0xff]  }
 0xba5   : > { %v3041_v23 = vadd.f32 %v4058_v21, %v3566_v24  ;;  %v3032_v0 = vpop.f32.mrb[125].mxu1 }
 0xba6   : > { %v3033_v16 = vadd.f32 %v3566_v24, %v3032_v0  ;;  %v4059_v58 = vpop.f32.mrb[126].mxu1 }
 0xba7   : > { %v3053_v63 = vmax.f32 %v3041_v23, 0.0  ;;  %v3044_v12 = vadd.f32 %v4059_v58, %v3566_v24  ;;  %v3035_v17 = vpop.f32.mrb[127].mxu1 }
 0xba8   : > { %v3051_v22 = vmax.f32 %v3033_v16, 0.0  ;;  %v3036_v33 = vadd.f32 %v3566_v24, %v3035_v17 }
 0xba9   : > { %v3061_v29 = vadd.f32 %v3053_v63, %v5330_v37  ;;  %v3054_v48 = vmax.f32 %v3044_v12, 0.0 }
 0xbaa   : > { %v3059_v1 = vadd.f32 %v3051_v22, %v5324_v45  ;;  %v3052_v50 = vmax.f32 %v3036_v33, 0.0  ;;  %v4158_v45 = vld [vmem:[%s5441_s5 + $0x10] sm:$0xff]  }
 0xbab   : > { %v3065_v8 = vadd.f32 %v3061_v29, %v3057_v59  ;;  %v3062_v4 = vadd.f32 %v3054_v48, %v5321_v10  ;;  %v3576_v10 = vld [vmem:[%s5442_s6] ss:$0 sm:$0xff] }
 0xbac   : > { %v3063_v28 = vadd.f32 %v3059_v1, %v3055_v46  ;;  %v3060_v11 = vadd.f32 %v3052_v50, %v5327_v43 }
 0xbad   : > { %v3066_v9 = vadd.f32 %v3062_v4, %v3058_v34  ;;  %v3069_v15 = vmul.f32 0.5, %v3065_v8 }
 0xbae   : > { %v3064_v36 = vadd.f32 %v3060_v11, %v3056_v3  ;;  %v3067_v27 = vmul.f32 0.5, %v3063_v28 }
 0xbaf   : > { %v3070_v37 = vmul.f32 0.5, %v3066_v9 }
 0xbb0   : > { %v3068_v47 = vmul.f32 0.5, %v3064_v36 }
 0xbb1   : > { %v3146_v38 = vpack.c.bf16 %v3070_v37, %v3069_v15 }
 0xbb2   : > { %v3076_v35 = vpack.c.bf16 %v3068_v47, %v3067_v27 }
 0xbb4   : > { %4065 = vmatmul.mubr.msk.bf16.vlgmr.msra.gmra.mrb[128].mxu0 %vm679_vm1, %v3076_v35 }
 0xbb5   : > { %4069 = vmatpush3.bf16.msra.mxu0 %v4158_v45  ;;  %4072 = vmatprep.mubr.msk.bf16.mxu0 %vm4226_vm2, %v4225_v6 }
 0xbb6   : > { %4070 = vmatprep.subr.bf16.mxu0 %v4225_v6 }
 0xbb9   : > { %4071 = vmatpush3.bf16.msra.mxu0 %v4159_v61 }
 0xbc0   : > { %4073 = vmatmul.mubr.msk.bf16.vlgmr.msra.gmra.mrb[128].mxu0 %vm679_vm1, %v3146_v38 }
 0xc93   : > { %v3196_v43 = vpop.f32.mrb[128].mxu0 }
 0xc94   : > { %v4082_v13 = vadd.f32 %v3576_v10, %v3196_v43  ;;  %v4074_v57 = vpop.f32.mrb[129].mxu0 }
 0xc95   : > { %v3199_v25 = vpop.f32.mrb[130].mxu0 }
 0xc96   : > { %v4083_v31 = vadd.f32 %v3576_v10, %v3199_v25  ;;  %v4075_v60 = vpop.f32.mrb[131].mxu0  ;;  %v3205_v32 = vmax.f32 %v4082_v13, 0.0 }
 0xc98   : > { %v3206_v7 = vmax.f32 %v4083_v31, 0.0 }
 0xc9a   : > { %v3209_v2 = vpack.c.bf16 %v3206_v7, %v3205_v32 }
 0xc9c   : > { %4079 = vmatmul.mubr.msk.bf16.vlgmr.msra.gmra.mrb[128].mxu1 %vm398_vm0, %v3209_v2 }
 0xd6f   : > { %v3260_v14 = vpop.f32.mrb[128].mxu1 }
 0xd70   : > { %v3261_v40 = vadd.f32 %v3584_v19, %v3260_v14  ;;  %v4080_v49 = vpop.f32.mrb[129].mxu1 }
 0xd71   : > { %v3263_v26 = vpop.f32.mrb[130].mxu1 }
 0xd72   : > { %3267 = vst [vmem:[%s326_s22] sm:$0xff] %v3261_v40  ;;  %v3264_v6 = vadd.f32 %v3584_v19, %v3263_v26  ;;  %v4081_v5 = vpop.f32.mrb[131].mxu1 }
 0xd74   : > { %3268 = vst [vmem:[%s326_s22 + $0x8] sm:$0xff] %v3264_v6 }
 0xd75   : > { %4174 = shalt.err (!%p4171_p3)
}
 0xd76   : > { %s4175_s14 = scalar_lea.hbm %s5393_s27, 256  ;;  %s4179_s24 = scalar_lea.hbm %s5445_s9, 512 }
 0xd77   : > { %p4176_p4 = scmp.ne.s32.totalorder %s5393_s27, %s4175_s14  ;;  %p4180_p9 = scmp.lt.u32.totalorder %s5393_s27, %s5445_s9 }
 0xd78   : > { %p4181_p10 = scmp.lt.u32.totalorder %s4179_s24, %s4175_s14  ;;  %p4183_p12 = scmp.lt.u32.totalorder %s4175_s14, %s5393_s27 }
 0xd79   : > { %p4177_p7 = pnand %p4176_p4, %p4318_p5 }
 0xd7a   : > { %p4182_p11 = por %p4181_p10, %p4180_p9 }
 0xd7b   : > { %p4178_p8 = pneg %p4177_p7 }
 0xd7c   : > { %p4184_p13 = por %p4183_p12, %p4182_p11 }
 0xd7e   : > { %p4185_p0 = pnand %p4184_p13, %p4178_p8 }
 0xd80   : > { %4188 = shalt.err (!%p4185_p0)
}
 0xd81   : > { %s4228_s13 = smov 128   ;;  %s4229_s29 = smov 8  }
 0xd82   : > { %4088 = dma.vmem_to_hbm [thread:$0]  (%p4318_p5), %s5388_s23, 256, %s5393_s27, %s5395_s28, %s4228_s13, %s4228_s13, %s4229_s29  }
 0xd83 PF: > { %p4094_p1 = scmp.ge.s32.totalorder %s4223_s12, 2  ;;  %s3298_s16 = sand.u32 1, %s4211_s30  }
 0xd84   : > { %s3299_s17 = scalar_lea.sflag [#allocation3], %s3298_s16 }
 0xd85   : > { %p4091_p2 = pnand %p4094_p1, %p4322_p6 }
 0xd87   : > { %4206 = dma.done.wait (!%p4091_p2), %s3299_s17, 256  }
 0xd88   : > { %4208 = vsyncadd (!%p4091_p2), %s3299_s17, 4294967040  ;;  %p19_p3 = scmp.ge.s32.totalorder %s4305_s15, 4   ;;  %s5492_s30 = smov %s4215_s10 }
 0xd89   : > { %s5493_s10 = smov %s4219_s11  ;;  %s5494_s11 = smov %s4316_s18 }
 0xd8a   : > { %s5495_s12 = smov %s4305_s15  ;;  %21 = sbr.rel (!%p19_p3) target bundleno = 3 (0x3), region = 114 }
 0xd91   :  { %3304 = vsyncpa [#allocation3], 1 }
 0xd92   :  { %3306 = vsyncpa [#allocation3 + $0x1], 1 }

</bundles_post_ra>
